<compile_context>
chip_gen: v7x
topology: tpu7x:2x2x1
jax: 0.10.0
libtpu: 0.0.40
codegen_flags: <defaults>
</compile_context>

<pallas_src>
import functools

import jax
import jax.numpy as jnp
import numpy as np
from jax.experimental import pallas as pl
from jax.experimental.pallas import tpu as pltpu

_TB = 8          # sequences per batch block (keeps per-step slices 8-sublane aligned)
_DIR_PAD = 128   # per-direction gate-block width (3H padded up to a lane boundary)


# --------------------------------------------------------------------------- #
# Fused kernel: char-CNN (+ReLU+max-pool) + hoisted GRU input projection +
# direction-fused bidirectional GRU recurrence, one batch block per grid step.
# --------------------------------------------------------------------------- #
def _fused_ins_encoder_kernel(*refs, kernels, O, H, L, dirs, TB, S, W):
    """Refs (in order), all for ONE batch block of TB sequences (NB = S*TB rows):
         zw      (NB, E)            f32 word embeddings, time-major rows
         ce      (W*NB, E)          bf16 char embeddings, char-position-major then rows
         w_stack (E, sum(k)*O)      bf16 conv taps stacked on the output-channel axis
         conv_b  (nk, O)            f32 conv biases
         per GRU layer:
           wih   (D_l, dirs*128)    f32, direction d in lanes [d*128, d*128+3H)
           bih   (1, dirs*128)      f32, r/z thirds of bhh already folded in
           whh   (dirs*H, dirs*128) f32 block-diagonal hidden->gate weights
           bhh_n (1, dirs*128)      f32, only the n-gate third is nonzero
       Output:
         out     (NB, 128)          f32, [h_fwd | h_bwd | zero pad] per time-major row
    """
    zw_ref, ce_ref, wstack_ref, convb_ref = refs[:4]
    gru_refs = refs[4:4 + 4 * L]
    out_ref = refs[4 + 4 * L]

    NB = S * TB
    G = 3 * H
    P = _DIR_PAD

    # ---- char CNN: one MXU pass for every tap of every width ------------------------ #
    proj = jnp.dot(ce_ref[...], wstack_ref[...],
                   preferred_element_type=jnp.float32)            # (W*NB, sum(k)*O) f32
    conv_b = convb_ref[...]                                       # (nk, O)
    feats = []
    base = 0
    for ki, k in enumerate(kernels):
        t = W - k + 1
        pooled = None
        for p in range(t):                                        # conv output positions
            acc = None
            for j in range(k):                                    # taps (static unroll)
                row0 = (p + j) * NB                               # sublane-aligned rows
                tap = proj[row0:row0 + NB, base + j * O:base + (j + 1) * O]
                acc = tap if acc is None else acc + tap
            pooled = acc if pooled is None else jnp.maximum(pooled, acc)   # VPU max-pool
        # bias + ReLU hoisted out of the pooling loop (both monotone -> equivalent).
        feats.append(jnp.maximum(pooled + conv_b[ki:ki + 1, :], 0.0))      # (NB, O)
        base += k * O

    # ---- GRU layers ------------------------------------------------------------------ #
    x = jnp.concatenate([zw_ref[...]] + feats, axis=-1)           # (NB, E + nk*O)
    for layer in range(L):
        wih_ref, bih_ref, whh_ref, bhhn_ref = gru_refs[4 * layer:4 * layer + 4]
        # Input projection for ALL timesteps and BOTH directions in one matmul,
        # hoisted out of the serial recurrence.
        gi_all = jnp.dot(x, wih_ref[...],
                         preferred_element_type=jnp.float32) + bih_ref[...]  # (NB, dirs*P)
        whh = whh_ref[...]                                        # (dirs*H, dirs*P)
        bhh_b = jnp.broadcast_to(bhhn_ref[...], (TB, dirs * P))   # hoisted broadcast

        h_cat = jnp.zeros((TB, dirs * H), jnp.float32)            # initial_h = zeros
        hs = [[None] * S for _ in range(dirs)]
        # TODO(synk): at production S replace this static unroll with lax.fori_loop
        # (unroll=2..4) + pl.ds/pl.multiple_of slices to bound vreg live ranges.
        for step in range(S):
            # One block-diagonal MXU push covers both directions' hidden->gate matmuls.
            gh = jnp.dot(h_cat, whh, preferred_element_type=jnp.float32) + bhh_b
            new_h = []
            for d in range(dirs):
                t = step if d == 0 else S - 1 - step              # backward: reversed t
                gi = gi_all[t * TB:(t + 1) * TB, d * P:d * P + G]
                gh_d = gh[:, d * P:d * P + G]
                h_d = h_cat[:, d * H:(d + 1) * H]
                u = gi[:, :2 * H] + gh_d[:, :2 * H]
                r = jax.nn.sigmoid(u[:, :H])
                z = jax.nn.sigmoid(u[:, H:])
                n = jnp.tanh(gi[:, 2 * H:] + r * gh_d[:, 2 * H:])
                h_d = (1.0 - z) * n + z * h_d
                new_h.append(h_d)
                hs[d][t] = h_d
            h_cat = jnp.concatenate(new_h, axis=-1)

        # Re-assemble this layer's time-major output in registers (no per-step stores).
        rows = [jnp.concatenate([hs[d][t] for d in range(dirs)], axis=-1)
                for t in range(S)]
        x = jnp.concatenate(rows, axis=0)                         # (NB, dirs*H)

    # ---- single lane-dense store (dirs*H padded up to 128 lanes) --------------------- #
    pad = out_ref.shape[-1] - dirs * H
    out = (jnp.concatenate([x, jnp.zeros((NB, pad), jnp.float32)], axis=-1)
           if pad else x)
    out_ref[...] = out


# --------------------------------------------------------------------------- #
# Model wrapper (embedding gathers + relayout + weight repacking in plain JAX)
# --------------------------------------------------------------------------- #
CFG = dict(
    embedding_dim=16,
    num_word_embeddings=50,
    num_char_embeddings=30,
    kernels=(2, 3),
    num_input_channels=16,     # == embedding_dim (conv runs on char embeddings)
    num_output_channels=16,
    rnn_hidden_dim=32,
    num_layers=1,
    bidirectional=True,
)


def init_params(key, cfg):
    e = cfg["embedding_dim"]
    o = cfg["num_output_channels"]
    h = cfg["rnn_hidden_dim"]
    dirs = 2 if cfg["bidirectional"] else 1
    d_in = e + len(cfg["kernels"]) * o     # == embedding_dim*(len(kernels)+1) when o == e

    keys = iter(jax.random.split(key, 64))
    p = {}
    word_emb = 0.2 * jax.random.normal(next(keys),
                                       (cfg["num_word_embeddings"], e), jnp.float32)
    char_emb = 0.2 * jax.random.normal(next(keys),
                                       (cfg["num_char_embeddings"], e), jnp.float32)
    p["word_emb"] = word_emb.at[0].set(0.0)   # padding_idx rows are zero
    p["char_emb"] = char_emb.at[0].set(0.0)

    p["convs"] = []
    for k in cfg["kernels"]:
        w = 0.3 * jax.random.normal(next(keys), (k, e, o), jnp.float32)   # (k, E, O)
        b = 0.3 * jax.random.normal(next(keys), (1, o), jnp.float32)
        p["convs"].append((w, b))

    p["gru"] = []
    for layer in range(cfg["num_layers"]):
        d_layer = d_in if layer == 0 else h * dirs
        per_dir = []
        for _ in range(dirs):
            wih_t = 0.2 * jax.random.normal(next(keys), (d_layer, 3 * h), jnp.float32)
            whh_t = 0.2 * jax.random.normal(next(keys), (h, 3 * h), jnp.float32)
            bih = 0.3 * jax.random.normal(next(keys), (1, 3 * h), jnp.float32)
            bhh = 0.3 * jax.random.normal(next(keys), (1, 3 * h), jnp.float32)
            per_dir.append((wih_t, whh_t, bih, bhh))
        p["gru"].append(per_dir)
    return p


def ins_encoder_forward(params, cfg, x_word, x_char, x_lengths):
    # x_lengths accepted but unused: the PyTorch forward never packs the sequence, so
    # padded timesteps flow through the GRU exactly as in the reference module.
    del x_lengths
    B, S = x_word.shape
    W = x_char.shape[-1]
    E = cfg["embedding_dim"]
    O = cfg["num_output_channels"]
    H = cfg["rnn_hidden_dim"]
    L = cfg["num_layers"]
    dirs = 2 if cfg["bidirectional"] else 1
    kernels = tuple(cfg["kernels"])
    nk = len(kernels)
    P = _DIR_PAD
    assert cfg["num_input_channels"] == E
    assert 3 * H <= P and dirs * H <= P

    TB = _TB
    B_pad = -(-B // TB) * TB
    nblk = B_pad // TB
    NB = S * TB

    if B_pad != B:   # pad batch with padding-idx rows; sliced off again after the kernel
        x_word = jnp.pad(x_word, ((0, B_pad - B), (0, 0)))
        x_char = jnp.pad(x_char, ((0, B_pad - B), (0, 0), (0, 0)))

    # Embedding gathers stay in XLA (data-dependent gather); relayout into batch blocks
    # with time-major rows (row = s*TB + b) and W as the leading axis for the char CNN.
    zw = params["word_emb"][x_word]                                    # (B_pad, S, E)
    zw = zw.reshape(nblk, TB, S, E).transpose(0, 2, 1, 3).reshape(nblk, NB, E)
    ce = params["char_emb"][x_char]                                    # (B_pad, S, W, E)
    ce = (ce.reshape(nblk, TB, S, W, E).transpose(0, 3, 2, 1, 4)       # (nblk,W,S,TB,E)
            .reshape(nblk, W * NB, E).astype(jnp.bfloat16))

    # All conv taps stacked along the output-channel axis -> ONE in-kernel MXU pass.
    w_stack = jnp.concatenate(
        [w[j] for (w, _) in params["convs"] for j in range(w.shape[0])],
        axis=-1).astype(jnp.bfloat16)                                  # (E, sum(k)*O)
    conv_b = jnp.concatenate([b for (_, b) in params["convs"]], axis=0)  # (nk, O)

    # GRU weight repacking: per-direction 128-lane padded gate blocks, block-diagonal
    # Whh for the fused two-direction step, r/z thirds of bhh folded into bih.
    gru_in = []
    for layer in range(L):
        per_dir = params["gru"][layer]
        D_l = per_dir[0][0].shape[0]
        wih = jnp.zeros((D_l, dirs * P), jnp.float32)
        bih = jnp.zeros((1, dirs * P), jnp.float32)
        whh = jnp.zeros((dirs * H, dirs * P), jnp.float32)
        bhh_n = jnp.zeros((1, dirs * P), jnp.float32)
        for d, (wih_t, whh_t, b_ih, b_hh) in enumerate(per_dir):
            c0 = d * P
            wih = wih.at[:, c0:c0 + 3 * H].set(wih_t)
            bih = bih.at[:, c0:c0 + 2 * H].set(b_ih[:, :2 * H] + b_hh[:, :2 * H])
            bih = bih.at[:, c0 + 2 * H:c0 + 3 * H].set(b_ih[:, 2 * H:])
            whh = whh.at[d * H:(d + 1) * H, c0:c0 + 3 * H].set(whh_t)
            bhh_n = bhh_n.at[:, c0 + 2 * H:c0 + 3 * H].set(b_hh[:, 2 * H:])
        gru_in += [wih, bih, whh, bhh_n]

    kernel = functools.partial(
        _fused_ins_encoder_kernel,
        kernels=kernels, O=O, H=H, L=L, dirs=dirs, TB=TB, S=S, W=W)

    # Per-block inputs tile over the leading (batch-block) axis; weights get constant
    # index maps so they stay VMEM-resident across grid steps.
    sumk = sum(kernels)
    in_specs = [
        pl.BlockSpec((None, NB, E), lambda i: (i, 0, 0)),            # zw  (per block)
        pl.BlockSpec((None, W * NB, E), lambda i: (i, 0, 0)),        # ce  (per block)
        pl.BlockSpec((E, sumk * O), lambda i: (0, 0)),               # conv tap stack
        pl.BlockSpec((nk, O), lambda i: (0, 0)),                     # conv biases
    ]
    for layer in range(L):
        D_l = gru_in[4 * layer].shape[0]
        in_specs += [
            pl.BlockSpec((D_l, dirs * P), lambda i: (0, 0)),         # wih (padded)
            pl.BlockSpec((1, dirs * P), lambda i: (0, 0)),           # bih (+ folded bhh)
            pl.BlockSpec((dirs * H, dirs * P), lambda i: (0, 0)),    # block-diag whh
            pl.BlockSpec((1, dirs * P), lambda i: (0, 0)),           # bhh n-gate third
        ]

    out_blocks = pl.pallas_call(
        kernel,
        out_shape=jax.ShapeDtypeStruct((nblk, NB, P), jnp.float32),
        grid=(nblk,),
        in_specs=in_specs,
        out_specs=pl.BlockSpec((None, NB, P), lambda i: (i, 0, 0)),
        compiler_params=pltpu.CompilerParams(
            dimension_semantics=("parallel",),         # megacore / v7x second TC
            vmem_limit_bytes=32 * 1024 * 1024),        # safe on v5e/v6e/v7x
    )(zw, ce, w_stack, conv_b, *gru_in)

    # (nblk, S*TB, 128) time-major blocks -> (B, S, dirs*H) batch-first.
    out = out_blocks[..., :dirs * H].reshape(nblk, S, TB, dirs * H)
    out = out.transpose(0, 2, 1, 3).reshape(B_pad, S, dirs * H)
    return out[:B]


# --------------------------------------------------------------------------- #
# Pure-JAX reference (numerical sanity check)
# --------------------------------------------------------------------------- #
def conv_ref(x_nwc, w_keo, b_1o, ksize):
    t = x_nwc.shape[1] - ksize + 1
    acc = jnp.zeros((x_nwc.shape[0], t, w_keo.shape[-1]), jnp.float32)
    for j in range(ksize):
        acc = acc + jnp.einsum("nte,eo->nto", x_nwc[:, j:j + t, :], w_keo[j])
    acc = jnp.maximum(acc + b_1o[None], 0.0)
    return jnp.max(acc, axis=1)


def gru_direction_ref(x_sbd, wih_t, whh_t, bih, bhh):
    hdim = whh_t.shape[0]

    def step(h, x_t):
        gi = x_t @ wih_t + bih
        gh = h @ whh_t + bhh
        r = jax.nn.sigmoid(gi[:, :hdim] + gh[:, :hdim])
        z = jax.nn.sigmoid(gi[:, hdim:2 * hdim] + gh[:, hdim:2 * hdim])
        n = jnp.tanh(gi[:, 2 * hdim:] + r * gh[:, 2 * hdim:])
        h_new = (1.0 - z) * n + z * h
        return h_new, h_new

    h0 = jnp.zeros((x_sbd.shape[1], hdim), jnp.float32)
    _, ys = jax.lax.scan(step, h0, x_sbd)
    return ys


def ins_encoder_forward_ref(params, cfg, x_word, x_char, x_lengths):
    del x_lengths
    b, s, wlen = x_char.shape
    ce = params["char_emb"][x_char.reshape(-1, wlen)]
    zs = [conv_ref(ce, w, bias, k)
          for k, (w, bias) in zip(cfg["kernels"], params["convs"])]
    z_char = jnp.concatenate(zs, axis=-1).reshape(b, s, -1)
    z_word = params["word_emb"][x_word]
    z = jnp.concatenate([z_word, z_char], axis=-1)

    dirs = 2 if cfg["bidirectional"] else 1
    x = jnp.transpose(z, (1, 0, 2))                     # (S, B, D) time-major
    for layer in range(cfg["num_layers"]):
        outs = []
        for d in range(dirs):
            wih_t, whh_t, bih, bhh = params["gru"][layer][d]
            inp = x if d == 0 else x[::-1]
            out = gru_direction_ref(inp, wih_t, whh_t, bih, bhh)
            if d == 1:
                out = out[::-1]
            outs.append(out)
        x = jnp.concatenate(outs, axis=-1)
    return jnp.transpose(x, (1, 0, 2))                  # (B, S, H*dirs)


# --------------------------------------------------------------------------- #
if __name__ == "__main__":
    cfg = CFG
    key = jax.random.PRNGKey(0)
    k_params, k_word, k_char = jax.random.split(key, 3)

    B, S, WLEN = 2, 8, 6
    params = init_params(k_params, cfg)
    x_word = jax.random.randint(k_word, (B, S), 0, cfg["num_word_embeddings"],
                                dtype=jnp.int32)
    x_char = jax.random.randint(k_char, (B, S, WLEN), 0, cfg["num_char_embeddings"],
                                dtype=jnp.int32)
    x_lengths = jnp.full((B,), S, dtype=jnp.int32)

    fwd = jax.jit(lambda p, xw, xc, xl: ins_encoder_forward(p, cfg, xw, xc, xl))
    out = jax.block_until_ready(fwd(params, x_word, x_char, x_lengths))

    ref = ins_encoder_forward_ref(params, cfg, x_word, x_char, x_lengths)
    err = float(jnp.max(jnp.abs(out - ref)))
    dirs = 2 if cfg["bidirectional"] else 1
    assert out.shape == (B, S, cfg["rnn_hidden_dim"] * dirs)
    assert np.isfinite(np.asarray(out)).all()
    # Tolerance covers the bf16 char-conv projection + MXU f32 matmul passes; everything
    # feeding and inside the recurrence is f32, so real layout/gate bugs show up >> this.
    assert err < 2e-2, f"mismatch vs reference: max abs err {err}"

    print("KERNEL_OK")
</pallas_src>

<mosaic_0001>
module attributes {stable_mosaic.version = 11 : i64} {
  func.func @_fused_ins_encoder_kernel(%arg0: i32, %arg1: memref<1x64x16xf32, #tpu.memory_space<vmem>>, %arg2: memref<1x384x16xbf16, #tpu.memory_space<vmem>>, %arg3: memref<16x80xbf16, #tpu.memory_space<vmem>>, %arg4: memref<2x16xf32, #tpu.memory_space<vmem>>, %arg5: memref<48x256xf32, #tpu.memory_space<vmem>>, %arg6: memref<1x256xf32, #tpu.memory_space<vmem>>, %arg7: memref<64x256xf32, #tpu.memory_space<vmem>>, %arg8: memref<1x256xf32, #tpu.memory_space<vmem>>, %arg9: memref<1x64x128xf32, #tpu.memory_space<vmem>>) attributes {dimension_semantics = [#tpu.dimension_semantics<parallel>], iteration_bounds = array<i64: 1>, scalar_prefetch = 0 : i64, scratch_operands = 0 : i64, tpu.core_type = #tpu.core_type<tc>, window_params = [{transform_indices = @transform_0, window_bounds = array<i64: 1, 64, 16>}, {transform_indices = @transform_1, window_bounds = array<i64: 1, 384, 16>}, {pipeline_mode = #tpu.pipeline_mode<synchronous>, transform_indices = @transform_2, window_bounds = array<i64: 16, 80>}, {pipeline_mode = #tpu.pipeline_mode<synchronous>, transform_indices = @transform_3, window_bounds = array<i64: 2, 16>}, {pipeline_mode = #tpu.pipeline_mode<synchronous>, transform_indices = @transform_4, window_bounds = array<i64: 48, 256>}, {pipeline_mode = #tpu.pipeline_mode<synchronous>, transform_indices = @transform_5, window_bounds = array<i64: 1, 256>}, {pipeline_mode = #tpu.pipeline_mode<synchronous>, transform_indices = @transform_6, window_bounds = array<i64: 64, 256>}, {pipeline_mode = #tpu.pipeline_mode<synchronous>, transform_indices = @transform_7, window_bounds = array<i64: 1, 256>}, {transform_indices = @transform_8, window_bounds = array<i64: 1, 64, 128>}]} {
    %c0 = arith.constant 0 : index
    %c0_0 = arith.constant 0 : index
    %c0_1 = arith.constant 0 : index
    %0 = vector.load %arg2[%c0, %c0_0, %c0_1] : memref<1x384x16xbf16, #tpu.memory_space<vmem>>, vector<1x384x16xbf16>
    %1 = vector.shape_cast %0 : vector<1x384x16xbf16> to vector<384x16xbf16>
    %c0_2 = arith.constant 0 : index
    %c0_3 = arith.constant 0 : index
    %2 = vector.load %arg3[%c0_2, %c0_3] : memref<16x80xbf16, #tpu.memory_space<vmem>>, vector<16x80xbf16>
    %cst = arith.constant dense<0.000000e+00> : vector<384x80xf32>
    %3 = tpu.matmul %1, %2, %cst {dimension_numbers = #tpu.dot_dimension_numbers<[1], [0], [0], [1], [0, 0, 1, 1], [], []>} : vector<384x16xbf16>, vector<16x80xbf16>, vector<384x80xf32> -> vector<384x80xf32>
    %c0_4 = arith.constant 0 : index
    %c0_5 = arith.constant 0 : index
    %4 = vector.load %arg4[%c0_4, %c0_5] : memref<2x16xf32, #tpu.memory_space<vmem>>, vector<2x16xf32>
    %5 = vector.extract_strided_slice %3 {offsets = [0, 0], sizes = [64, 16], strides = [1, 1]} : vector<384x80xf32> to vector<64x16xf32>
    %6 = vector.extract_strided_slice %3 {offsets = [64, 16], sizes = [64, 16], strides = [1, 1]} : vector<384x80xf32> to vector<64x16xf32>
    %7 = arith.addf %5, %6 : vector<64x16xf32>
    %8 = vector.extract_strided_slice %3 {offsets = [64, 0], sizes = [64, 16], strides = [1, 1]} : vector<384x80xf32> to vector<64x16xf32>
    %9 = vector.extract_strided_slice %3 {offsets = [128, 16], sizes = [64, 16], strides = [1, 1]} : vector<384x80xf32> to vector<64x16xf32>
    %10 = arith.addf %8, %9 : vector<64x16xf32>
    %11 = arith.maximumf %7, %10 : vector<64x16xf32>
    %12 = vector.extract_strided_slice %3 {offsets = [128, 0], sizes = [64, 16], strides = [1, 1]} : vector<384x80xf32> to vector<64x16xf32>
    %13 = vector.extract_strided_slice %3 {offsets = [192, 16], sizes = [64, 16], strides = [1, 1]} : vector<384x80xf32> to vector<64x16xf32>
    %14 = arith.addf %12, %13 : vector<64x16xf32>
    %15 = arith.maximumf %11, %14 : vector<64x16xf32>
    %16 = vector.extract_strided_slice %3 {offsets = [192, 0], sizes = [64, 16], strides = [1, 1]} : vector<384x80xf32> to vector<64x16xf32>
    %17 = vector.extract_strided_slice %3 {offsets = [256, 16], sizes = [64, 16], strides = [1, 1]} : vector<384x80xf32> to vector<64x16xf32>
    %18 = arith.addf %16, %17 : vector<64x16xf32>
    %19 = arith.maximumf %15, %18 : vector<64x16xf32>
    %20 = vector.extract_strided_slice %3 {offsets = [256, 0], sizes = [64, 16], strides = [1, 1]} : vector<384x80xf32> to vector<64x16xf32>
    %21 = vector.extract_strided_slice %3 {offsets = [320, 16], sizes = [64, 16], strides = [1, 1]} : vector<384x80xf32> to vector<64x16xf32>
    %22 = arith.addf %20, %21 : vector<64x16xf32>
    %23 = arith.maximumf %19, %22 : vector<64x16xf32>
    %24 = vector.extract_strided_slice %4 {offsets = [0, 0], sizes = [1, 16], strides = [1, 1]} : vector<2x16xf32> to vector<1x16xf32>
    %25 = vector.broadcast %24 : vector<1x16xf32> to vector<64x16xf32>
    %26 = arith.addf %23, %25 : vector<64x16xf32>
    %cst_6 = arith.constant 0.000000e+00 : f32
    %27 = vector.broadcast %cst_6 : f32 to vector<64x16xf32>
    %28 = arith.maximumf %26, %27 : vector<64x16xf32>
    %29 = vector.extract_strided_slice %3 {offsets = [0, 32], sizes = [64, 16], strides = [1, 1]} : vector<384x80xf32> to vector<64x16xf32>
    %30 = vector.extract_strided_slice %3 {offsets = [64, 48], sizes = [64, 16], strides = [1, 1]} : vector<384x80xf32> to vector<64x16xf32>
    %31 = arith.addf %29, %30 : vector<64x16xf32>
    %32 = vector.extract_strided_slice %3 {offsets = [128, 64], sizes = [64, 16], strides = [1, 1]} : vector<384x80xf32> to vector<64x16xf32>
    %33 = arith.addf %31, %32 : vector<64x16xf32>
    %34 = vector.extract_strided_slice %3 {offsets = [64, 32], sizes = [64, 16], strides = [1, 1]} : vector<384x80xf32> to vector<64x16xf32>
    %35 = vector.extract_strided_slice %3 {offsets = [128, 48], sizes = [64, 16], strides = [1, 1]} : vector<384x80xf32> to vector<64x16xf32>
    %36 = arith.addf %34, %35 : vector<64x16xf32>
    %37 = vector.extract_strided_slice %3 {offsets = [192, 64], sizes = [64, 16], strides = [1, 1]} : vector<384x80xf32> to vector<64x16xf32>
    %38 = arith.addf %36, %37 : vector<64x16xf32>
    %39 = arith.maximumf %33, %38 : vector<64x16xf32>
    %40 = vector.extract_strided_slice %3 {offsets = [128, 32], sizes = [64, 16], strides = [1, 1]} : vector<384x80xf32> to vector<64x16xf32>
    %41 = vector.extract_strided_slice %3 {offsets = [192, 48], sizes = [64, 16], strides = [1, 1]} : vector<384x80xf32> to vector<64x16xf32>
    %42 = arith.addf %40, %41 : vector<64x16xf32>
    %43 = vector.extract_strided_slice %3 {offsets = [256, 64], sizes = [64, 16], strides = [1, 1]} : vector<384x80xf32> to vector<64x16xf32>
    %44 = arith.addf %42, %43 : vector<64x16xf32>
    %45 = arith.maximumf %39, %44 : vector<64x16xf32>
    %46 = vector.extract_strided_slice %3 {offsets = [192, 32], sizes = [64, 16], strides = [1, 1]} : vector<384x80xf32> to vector<64x16xf32>
    %47 = vector.extract_strided_slice %3 {offsets = [256, 48], sizes = [64, 16], strides = [1, 1]} : vector<384x80xf32> to vector<64x16xf32>
    %48 = arith.addf %46, %47 : vector<64x16xf32>
    %49 = vector.extract_strided_slice %3 {offsets = [320, 64], sizes = [64, 16], strides = [1, 1]} : vector<384x80xf32> to vector<64x16xf32>
    %50 = arith.addf %48, %49 : vector<64x16xf32>
    %51 = arith.maximumf %45, %50 : vector<64x16xf32>
    %52 = vector.extract_strided_slice %4 {offsets = [1, 0], sizes = [1, 16], strides = [1, 1]} : vector<2x16xf32> to vector<1x16xf32>
    %53 = vector.broadcast %52 : vector<1x16xf32> to vector<64x16xf32>
    %54 = arith.addf %51, %53 : vector<64x16xf32>
    %cst_7 = arith.constant 0.000000e+00 : f32
    %55 = vector.broadcast %cst_7 : f32 to vector<64x16xf32>
    %56 = arith.maximumf %54, %55 : vector<64x16xf32>
    %c0_8 = arith.constant 0 : index
    %c0_9 = arith.constant 0 : index
    %c0_10 = arith.constant 0 : index
    %57 = vector.load %arg1[%c0_8, %c0_9, %c0_10] : memref<1x64x16xf32, #tpu.memory_space<vmem>>, vector<1x64x16xf32>
    %58 = vector.shape_cast %57 : vector<1x64x16xf32> to vector<64x16xf32>
    %59 = tpu.concatenate %58, %28, %56 in 1 : vector<64x16xf32>, vector<64x16xf32>, vector<64x16xf32> -> vector<64x48xf32>
    %c0_11 = arith.constant 0 : index
    %c0_12 = arith.constant 0 : index
    %60 = vector.load %arg5[%c0_11, %c0_12] : memref<48x256xf32, #tpu.memory_space<vmem>>, vector<48x256xf32>
    %cst_13 = arith.constant dense<0.000000e+00> : vector<64x256xf32>
    %61 = tpu.matmul %59, %60, %cst_13 {dimension_numbers = #tpu.dot_dimension_numbers<[1], [0], [0], [1], [0, 0, 1, 1], [], []>} : vector<64x48xf32>, vector<48x256xf32>, vector<64x256xf32> -> vector<64x256xf32>
    %c0_14 = arith.constant 0 : index
    %c0_15 = arith.constant 0 : index
    %62 = vector.load %arg6[%c0_14, %c0_15] : memref<1x256xf32, #tpu.memory_space<vmem>>, vector<1x256xf32>
    %63 = vector.broadcast %62 : vector<1x256xf32> to vector<64x256xf32>
    %64 = arith.addf %61, %63 : vector<64x256xf32>
    %c0_16 = arith.constant 0 : index
    %c0_17 = arith.constant 0 : index
    %65 = vector.load %arg7[%c0_16, %c0_17] : memref<64x256xf32, #tpu.memory_space<vmem>>, vector<64x256xf32>
    %c0_18 = arith.constant 0 : index
    %c0_19 = arith.constant 0 : index
    %66 = vector.load %arg8[%c0_18, %c0_19] : memref<1x256xf32, #tpu.memory_space<vmem>>, vector<1x256xf32>
    %67 = vector.shape_cast %66 : vector<1x256xf32> to vector<1x256xf32>
    %68 = vector.broadcast %67 : vector<1x256xf32> to vector<8x256xf32>
    %cst_20 = arith.constant 0.000000e+00 : f32
    %69 = vector.broadcast %cst_20 : f32 to vector<8x64xf32>
    %cst_21 = arith.constant dense<0.000000e+00> : vector<8x256xf32>
    %70 = tpu.matmul %69, %65, %cst_21 {dimension_numbers = #tpu.dot_dimension_numbers<[1], [0], [0], [1], [0, 0, 1, 1], [], []>} : vector<8x64xf32>, vector<64x256xf32>, vector<8x256xf32> -> vector<8x256xf32>
    %71 = arith.addf %70, %68 : vector<8x256xf32>
    %72 = vector.extract_strided_slice %64 {offsets = [0, 0], sizes = [8, 96], strides = [1, 1]} : vector<64x256xf32> to vector<8x96xf32>
    %73 = vector.extract_strided_slice %71 {offsets = [0, 0], sizes = [8, 96], strides = [1, 1]} : vector<8x256xf32> to vector<8x96xf32>
    %74 = vector.extract_strided_slice %69 {offsets = [0, 0], sizes = [8, 32], strides = [1, 1]} : vector<8x64xf32> to vector<8x32xf32>
    %75 = vector.extract_strided_slice %72 {offsets = [0, 0], sizes = [8, 64], strides = [1, 1]} : vector<8x96xf32> to vector<8x64xf32>
    %76 = vector.extract_strided_slice %73 {offsets = [0, 0], sizes = [8, 64], strides = [1, 1]} : vector<8x96xf32> to vector<8x64xf32>
    %77 = arith.addf %75, %76 : vector<8x64xf32>
    %78 = vector.extract_strided_slice %77 {offsets = [0, 0], sizes = [8, 32], strides = [1, 1]} : vector<8x64xf32> to vector<8x32xf32>
    %79 = arith.negf %78 : vector<8x32xf32>
    %80 = math.exp %79 : vector<8x32xf32>
    %cst_22 = arith.constant 1.000000e+00 : f32
    %81 = vector.broadcast %cst_22 : f32 to vector<8x32xf32>
    %82 = arith.addf %81, %80 : vector<8x32xf32>
    %83 = arith.divf %81, %82 : vector<8x32xf32>
    %84 = vector.extract_strided_slice %77 {offsets = [0, 32], sizes = [8, 32], strides = [1, 1]} : vector<8x64xf32> to vector<8x32xf32>
    %85 = arith.negf %84 : vector<8x32xf32>
    %86 = math.exp %85 : vector<8x32xf32>
    %cst_23 = arith.constant 1.000000e+00 : f32
    %87 = vector.broadcast %cst_23 : f32 to vector<8x32xf32>
    %88 = arith.addf %87, %86 : vector<8x32xf32>
    %89 = arith.divf %87, %88 : vector<8x32xf32>
    %90 = vector.extract_strided_slice %72 {offsets = [0, 64], sizes = [8, 32], strides = [1, 1]} : vector<8x96xf32> to vector<8x32xf32>
    %91 = vector.extract_strided_slice %73 {offsets = [0, 64], sizes = [8, 32], strides = [1, 1]} : vector<8x96xf32> to vector<8x32xf32>
    %92 = arith.mulf %83, %91 : vector<8x32xf32>
    %93 = arith.addf %90, %92 : vector<8x32xf32>
    %94 = math.tanh %93 : vector<8x32xf32>
    %cst_24 = arith.constant 1.000000e+00 : f32
    %95 = vector.broadcast %cst_24 : f32 to vector<8x32xf32>
    %96 = arith.subf %95, %89 : vector<8x32xf32>
    %97 = arith.mulf %96, %94 : vector<8x32xf32>
    %98 = arith.mulf %89, %74 : vector<8x32xf32>
    %99 = arith.addf %97, %98 : vector<8x32xf32>
    %100 = vector.extract_strided_slice %64 {offsets = [56, 128], sizes = [8, 96], strides = [1, 1]} : vector<64x256xf32> to vector<8x96xf32>
    %101 = vector.extract_strided_slice %71 {offsets = [0, 128], sizes = [8, 96], strides = [1, 1]} : vector<8x256xf32> to vector<8x96xf32>
    %102 = vector.extract_strided_slice %69 {offsets = [0, 32], sizes = [8, 32], strides = [1, 1]} : vector<8x64xf32> to vector<8x32xf32>
    %103 = vector.extract_strided_slice %100 {offsets = [0, 0], sizes = [8, 64], strides = [1, 1]} : vector<8x96xf32> to vector<8x64xf32>
    %104 = vector.extract_strided_slice %101 {offsets = [0, 0], sizes = [8, 64], strides = [1, 1]} : vector<8x96xf32> to vector<8x64xf32>
    %105 = arith.addf %103, %104 : vector<8x64xf32>
    %106 = vector.extract_strided_slice %105 {offsets = [0, 0], sizes = [8, 32], strides = [1, 1]} : vector<8x64xf32> to vector<8x32xf32>
    %107 = arith.negf %106 : vector<8x32xf32>
    %108 = math.exp %107 : vector<8x32xf32>
    %cst_25 = arith.constant 1.000000e+00 : f32
    %109 = vector.broadcast %cst_25 : f32 to vector<8x32xf32>
    %110 = arith.addf %109, %108 : vector<8x32xf32>
    %111 = arith.divf %109, %110 : vector<8x32xf32>
    %112 = vector.extract_strided_slice %105 {offsets = [0, 32], sizes = [8, 32], strides = [1, 1]} : vector<8x64xf32> to vector<8x32xf32>
    %113 = arith.negf %112 : vector<8x32xf32>
    %114 = math.exp %113 : vector<8x32xf32>
    %cst_26 = arith.constant 1.000000e+00 : f32
    %115 = vector.broadcast %cst_26 : f32 to vector<8x32xf32>
    %116 = arith.addf %115, %114 : vector<8x32xf32>
    %117 = arith.divf %115, %116 : vector<8x32xf32>
    %118 = vector.extract_strided_slice %100 {offsets = [0, 64], sizes = [8, 32], strides = [1, 1]} : vector<8x96xf32> to vector<8x32xf32>
    %119 = vector.extract_strided_slice %101 {offsets = [0, 64], sizes = [8, 32], strides = [1, 1]} : vector<8x96xf32> to vector<8x32xf32>
    %120 = arith.mulf %111, %119 : vector<8x32xf32>
    %121 = arith.addf %118, %120 : vector<8x32xf32>
    %122 = math.tanh %121 : vector<8x32xf32>
    %cst_27 = arith.constant 1.000000e+00 : f32
    %123 = vector.broadcast %cst_27 : f32 to vector<8x32xf32>
    %124 = arith.subf %123, %117 : vector<8x32xf32>
    %125 = arith.mulf %124, %122 : vector<8x32xf32>
    %126 = arith.mulf %117, %102 : vector<8x32xf32>
    %127 = arith.addf %125, %126 : vector<8x32xf32>
    %128 = tpu.concatenate %99, %127 in 1 : vector<8x32xf32>, vector<8x32xf32> -> vector<8x64xf32>
    %cst_28 = arith.constant dense<0.000000e+00> : vector<8x256xf32>
    %129 = tpu.matmul %128, %65, %cst_28 {dimension_numbers = #tpu.dot_dimension_numbers<[1], [0], [0], [1], [0, 0, 1, 1], [], []>} : vector<8x64xf32>, vector<64x256xf32>, vector<8x256xf32> -> vector<8x256xf32>
    %130 = arith.addf %129, %68 : vector<8x256xf32>
    %131 = vector.extract_strided_slice %64 {offsets = [8, 0], sizes = [8, 96], strides = [1, 1]} : vector<64x256xf32> to vector<8x96xf32>
    %132 = vector.extract_strided_slice %130 {offsets = [0, 0], sizes = [8, 96], strides = [1, 1]} : vector<8x256xf32> to vector<8x96xf32>
    %133 = vector.extract_strided_slice %128 {offsets = [0, 0], sizes = [8, 32], strides = [1, 1]} : vector<8x64xf32> to vector<8x32xf32>
    %134 = vector.extract_strided_slice %131 {offsets = [0, 0], sizes = [8, 64], strides = [1, 1]} : vector<8x96xf32> to vector<8x64xf32>
    %135 = vector.extract_strided_slice %132 {offsets = [0, 0], sizes = [8, 64], strides = [1, 1]} : vector<8x96xf32> to vector<8x64xf32>
    %136 = arith.addf %134, %135 : vector<8x64xf32>
    %137 = vector.extract_strided_slice %136 {offsets = [0, 0], sizes = [8, 32], strides = [1, 1]} : vector<8x64xf32> to vector<8x32xf32>
    %138 = arith.negf %137 : vector<8x32xf32>
    %139 = math.exp %138 : vector<8x32xf32>
    %cst_29 = arith.constant 1.000000e+00 : f32
    %140 = vector.broadcast %cst_29 : f32 to vector<8x32xf32>
    %141 = arith.addf %140, %139 : vector<8x32xf32>
    %142 = arith.divf %140, %141 : vector<8x32xf32>
    %143 = vector.extract_strided_slice %136 {offsets = [0, 32], sizes = [8, 32], strides = [1, 1]} : vector<8x64xf32> to vector<8x32xf32>
    %144 = arith.negf %143 : vector<8x32xf32>
    %145 = math.exp %144 : vector<8x32xf32>
    %cst_30 = arith.constant 1.000000e+00 : f32
    %146 = vector.broadcast %cst_30 : f32 to vector<8x32xf32>
    %147 = arith.addf %146, %145 : vector<8x32xf32>
    %148 = arith.divf %146, %147 : vector<8x32xf32>
    %149 = vector.extract_strided_slice %131 {offsets = [0, 64], sizes = [8, 32], strides = [1, 1]} : vector<8x96xf32> to vector<8x32xf32>
    %150 = vector.extract_strided_slice %132 {offsets = [0, 64], sizes = [8, 32], strides = [1, 1]} : vector<8x96xf32> to vector<8x32xf32>
    %151 = arith.mulf %142, %150 : vector<8x32xf32>
    %152 = arith.addf %149, %151 : vector<8x32xf32>
    %153 = math.tanh %152 : vector<8x32xf32>
    %cst_31 = arith.constant 1.000000e+00 : f32
    %154 = vector.broadcast %cst_31 : f32 to vector<8x32xf32>
    %155 = arith.subf %154, %148 : vector<8x32xf32>
    %156 = arith.mulf %155, %153 : vector<8x32xf32>
    %157 = arith.mulf %148, %133 : vector<8x32xf32>
    %158 = arith.addf %156, %157 : vector<8x32xf32>
    %159 = vector.extract_strided_slice %64 {offsets = [48, 128], sizes = [8, 96], strides = [1, 1]} : vector<64x256xf32> to vector<8x96xf32>
    %160 = vector.extract_strided_slice %130 {offsets = [0, 128], sizes = [8, 96], strides = [1, 1]} : vector<8x256xf32> to vector<8x96xf32>
    %161 = vector.extract_strided_slice %128 {offsets = [0, 32], sizes = [8, 32], strides = [1, 1]} : vector<8x64xf32> to vector<8x32xf32>
    %162 = vector.extract_strided_slice %159 {offsets = [0, 0], sizes = [8, 64], strides = [1, 1]} : vector<8x96xf32> to vector<8x64xf32>
    %163 = vector.extract_strided_slice %160 {offsets = [0, 0], sizes = [8, 64], strides = [1, 1]} : vector<8x96xf32> to vector<8x64xf32>
    %164 = arith.addf %162, %163 : vector<8x64xf32>
    %165 = vector.extract_strided_slice %164 {offsets = [0, 0], sizes = [8, 32], strides = [1, 1]} : vector<8x64xf32> to vector<8x32xf32>
    %166 = arith.negf %165 : vector<8x32xf32>
    %167 = math.exp %166 : vector<8x32xf32>
    %cst_32 = arith.constant 1.000000e+00 : f32
    %168 = vector.broadcast %cst_32 : f32 to vector<8x32xf32>
    %169 = arith.addf %168, %167 : vector<8x32xf32>
    %170 = arith.divf %168, %169 : vector<8x32xf32>
    %171 = vector.extract_strided_slice %164 {offsets = [0, 32], sizes = [8, 32], strides = [1, 1]} : vector<8x64xf32> to vector<8x32xf32>
    %172 = arith.negf %171 : vector<8x32xf32>
    %173 = math.exp %172 : vector<8x32xf32>
    %cst_33 = arith.constant 1.000000e+00 : f32
    %174 = vector.broadcast %cst_33 : f32 to vector<8x32xf32>
    %175 = arith.addf %174, %173 : vector<8x32xf32>
    %176 = arith.divf %174, %175 : vector<8x32xf32>
    %177 = vector.extract_strided_slice %159 {offsets = [0, 64], sizes = [8, 32], strides = [1, 1]} : vector<8x96xf32> to vector<8x32xf32>
    %178 = vector.extract_strided_slice %160 {offsets = [0, 64], sizes = [8, 32], strides = [1, 1]} : vector<8x96xf32> to vector<8x32xf32>
    %179 = arith.mulf %170, %178 : vector<8x32xf32>
    %180 = arith.addf %177, %179 : vector<8x32xf32>
    %181 = math.tanh %180 : vector<8x32xf32>
    %cst_34 = arith.constant 1.000000e+00 : f32
    %182 = vector.broadcast %cst_34 : f32 to vector<8x32xf32>
    %183 = arith.subf %182, %176 : vector<8x32xf32>
    %184 = arith.mulf %183, %181 : vector<8x32xf32>
    %185 = arith.mulf %176, %161 : vector<8x32xf32>
    %186 = arith.addf %184, %185 : vector<8x32xf32>
    %187 = tpu.concatenate %158, %186 in 1 : vector<8x32xf32>, vector<8x32xf32> -> vector<8x64xf32>
    %cst_35 = arith.constant dense<0.000000e+00> : vector<8x256xf32>
    %188 = tpu.matmul %187, %65, %cst_35 {dimension_numbers = #tpu.dot_dimension_numbers<[1], [0], [0], [1], [0, 0, 1, 1], [], []>} : vector<8x64xf32>, vector<64x256xf32>, vector<8x256xf32> -> vector<8x256xf32>
    %189 = arith.addf %188, %68 : vector<8x256xf32>
    %190 = vector.extract_strided_slice %64 {offsets = [16, 0], sizes = [8, 96], strides = [1, 1]} : vector<64x256xf32> to vector<8x96xf32>
    %191 = vector.extract_strided_slice %189 {offsets = [0, 0], sizes = [8, 96], strides = [1, 1]} : vector<8x256xf32> to vector<8x96xf32>
    %192 = vector.extract_strided_slice %187 {offsets = [0, 0], sizes = [8, 32], strides = [1, 1]} : vector<8x64xf32> to vector<8x32xf32>
    %193 = vector.extract_strided_slice %190 {offsets = [0, 0], sizes = [8, 64], strides = [1, 1]} : vector<8x96xf32> to vector<8x64xf32>
    %194 = vector.extract_strided_slice %191 {offsets = [0, 0], sizes = [8, 64], strides = [1, 1]} : vector<8x96xf32> to vector<8x64xf32>
    %195 = arith.addf %193, %194 : vector<8x64xf32>
    %196 = vector.extract_strided_slice %195 {offsets = [0, 0], sizes = [8, 32], strides = [1, 1]} : vector<8x64xf32> to vector<8x32xf32>
    %197 = arith.negf %196 : vector<8x32xf32>
    %198 = math.exp %197 : vector<8x32xf32>
    %cst_36 = arith.constant 1.000000e+00 : f32
    %199 = vector.broadcast %cst_36 : f32 to vector<8x32xf32>
    %200 = arith.addf %199, %198 : vector<8x32xf32>
    %201 = arith.divf %199, %200 : vector<8x32xf32>
    %202 = vector.extract_strided_slice %195 {offsets = [0, 32], sizes = [8, 32], strides = [1, 1]} : vector<8x64xf32> to vector<8x32xf32>
    %203 = arith.negf %202 : vector<8x32xf32>
    %204 = math.exp %203 : vector<8x32xf32>
    %cst_37 = arith.constant 1.000000e+00 : f32
    %205 = vector.broadcast %cst_37 : f32 to vector<8x32xf32>
    %206 = arith.addf %205, %204 : vector<8x32xf32>
    %207 = arith.divf %205, %206 : vector<8x32xf32>
    %208 = vector.extract_strided_slice %190 {offsets = [0, 64], sizes = [8, 32], strides = [1, 1]} : vector<8x96xf32> to vector<8x32xf32>
    %209 = vector.extract_strided_slice %191 {offsets = [0, 64], sizes = [8, 32], strides = [1, 1]} : vector<8x96xf32> to vector<8x32xf32>
    %210 = arith.mulf %201, %209 : vector<8x32xf32>
    %211 = arith.addf %208, %210 : vector<8x32xf32>
    %212 = math.tanh %211 : vector<8x32xf32>
    %cst_38 = arith.constant 1.000000e+00 : f32
    %213 = vector.broadcast %cst_38 : f32 to vector<8x32xf32>
    %214 = arith.subf %213, %207 : vector<8x32xf32>
    %215 = arith.mulf %214, %212 : vector<8x32xf32>
    %216 = arith.mulf %207, %192 : vector<8x32xf32>
    %217 = arith.addf %215, %216 : vector<8x32xf32>
    %218 = vector.extract_strided_slice %64 {offsets = [40, 128], sizes = [8, 96], strides = [1, 1]} : vector<64x256xf32> to vector<8x96xf32>
    %219 = vector.extract_strided_slice %189 {offsets = [0, 128], sizes = [8, 96], strides = [1, 1]} : vector<8x256xf32> to vector<8x96xf32>
    %220 = vector.extract_strided_slice %187 {offsets = [0, 32], sizes = [8, 32], strides = [1, 1]} : vector<8x64xf32> to vector<8x32xf32>
    %221 = vector.extract_strided_slice %218 {offsets = [0, 0], sizes = [8, 64], strides = [1, 1]} : vector<8x96xf32> to vector<8x64xf32>
    %222 = vector.extract_strided_slice %219 {offsets = [0, 0], sizes = [8, 64], strides = [1, 1]} : vector<8x96xf32> to vector<8x64xf32>
    %223 = arith.addf %221, %222 : vector<8x64xf32>
    %224 = vector.extract_strided_slice %223 {offsets = [0, 0], sizes = [8, 32], strides = [1, 1]} : vector<8x64xf32> to vector<8x32xf32>
    %225 = arith.negf %224 : vector<8x32xf32>
    %226 = math.exp %225 : vector<8x32xf32>
    %cst_39 = arith.constant 1.000000e+00 : f32
    %227 = vector.broadcast %cst_39 : f32 to vector<8x32xf32>
    %228 = arith.addf %227, %226 : vector<8x32xf32>
    %229 = arith.divf %227, %228 : vector<8x32xf32>
    %230 = vector.extract_strided_slice %223 {offsets = [0, 32], sizes = [8, 32], strides = [1, 1]} : vector<8x64xf32> to vector<8x32xf32>
    %231 = arith.negf %230 : vector<8x32xf32>
    %232 = math.exp %231 : vector<8x32xf32>
    %cst_40 = arith.constant 1.000000e+00 : f32
    %233 = vector.broadcast %cst_40 : f32 to vector<8x32xf32>
    %234 = arith.addf %233, %232 : vector<8x32xf32>
    %235 = arith.divf %233, %234 : vector<8x32xf32>
    %236 = vector.extract_strided_slice %218 {offsets = [0, 64], sizes = [8, 32], strides = [1, 1]} : vector<8x96xf32> to vector<8x32xf32>
    %237 = vector.extract_strided_slice %219 {offsets = [0, 64], sizes = [8, 32], strides = [1, 1]} : vector<8x96xf32> to vector<8x32xf32>
    %238 = arith.mulf %229, %237 : vector<8x32xf32>
    %239 = arith.addf %236, %238 : vector<8x32xf32>
    %240 = math.tanh %239 : vector<8x32xf32>
    %cst_41 = arith.constant 1.000000e+00 : f32
    %241 = vector.broadcast %cst_41 : f32 to vector<8x32xf32>
    %242 = arith.subf %241, %235 : vector<8x32xf32>
    %243 = arith.mulf %242, %240 : vector<8x32xf32>
    %244 = arith.mulf %235, %220 : vector<8x32xf32>
    %245 = arith.addf %243, %244 : vector<8x32xf32>
    %246 = tpu.concatenate %217, %245 in 1 : vector<8x32xf32>, vector<8x32xf32> -> vector<8x64xf32>
    %cst_42 = arith.constant dense<0.000000e+00> : vector<8x256xf32>
    %247 = tpu.matmul %246, %65, %cst_42 {dimension_numbers = #tpu.dot_dimension_numbers<[1], [0], [0], [1], [0, 0, 1, 1], [], []>} : vector<8x64xf32>, vector<64x256xf32>, vector<8x256xf32> -> vector<8x256xf32>
    %248 = arith.addf %247, %68 : vector<8x256xf32>
    %249 = vector.extract_strided_slice %64 {offsets = [24, 0], sizes = [8, 96], strides = [1, 1]} : vector<64x256xf32> to vector<8x96xf32>
    %250 = vector.extract_strided_slice %248 {offsets = [0, 0], sizes = [8, 96], strides = [1, 1]} : vector<8x256xf32> to vector<8x96xf32>
    %251 = vector.extract_strided_slice %246 {offsets = [0, 0], sizes = [8, 32], strides = [1, 1]} : vector<8x64xf32> to vector<8x32xf32>
    %252 = vector.extract_strided_slice %249 {offsets = [0, 0], sizes = [8, 64], strides = [1, 1]} : vector<8x96xf32> to vector<8x64xf32>
    %253 = vector.extract_strided_slice %250 {offsets = [0, 0], sizes = [8, 64], strides = [1, 1]} : vector<8x96xf32> to vector<8x64xf32>
    %254 = arith.addf %252, %253 : vector<8x64xf32>
    %255 = vector.extract_strided_slice %254 {offsets = [0, 0], sizes = [8, 32], strides = [1, 1]} : vector<8x64xf32> to vector<8x32xf32>
    %256 = arith.negf %255 : vector<8x32xf32>
    %257 = math.exp %256 : vector<8x32xf32>
    %cst_43 = arith.constant 1.000000e+00 : f32
    %258 = vector.broadcast %cst_43 : f32 to vector<8x32xf32>
    %259 = arith.addf %258, %257 : vector<8x32xf32>
    %260 = arith.divf %258, %259 : vector<8x32xf32>
    %261 = vector.extract_strided_slice %254 {offsets = [0, 32], sizes = [8, 32], strides = [1, 1]} : vector<8x64xf32> to vector<8x32xf32>
    %262 = arith.negf %261 : vector<8x32xf32>
    %263 = math.exp %262 : vector<8x32xf32>
    %cst_44 = arith.constant 1.000000e+00 : f32
    %264 = vector.broadcast %cst_44 : f32 to vector<8x32xf32>
    %265 = arith.addf %264, %263 : vector<8x32xf32>
    %266 = arith.divf %264, %265 : vector<8x32xf32>
    %267 = vector.extract_strided_slice %249 {offsets = [0, 64], sizes = [8, 32], strides = [1, 1]} : vector<8x96xf32> to vector<8x32xf32>
    %268 = vector.extract_strided_slice %250 {offsets = [0, 64], sizes = [8, 32], strides = [1, 1]} : vector<8x96xf32> to vector<8x32xf32>
    %269 = arith.mulf %260, %268 : vector<8x32xf32>
    %270 = arith.addf %267, %269 : vector<8x32xf32>
    %271 = math.tanh %270 : vector<8x32xf32>
    %cst_45 = arith.constant 1.000000e+00 : f32
    %272 = vector.broadcast %cst_45 : f32 to vector<8x32xf32>
    %273 = arith.subf %272, %266 : vector<8x32xf32>
    %274 = arith.mulf %273, %271 : vector<8x32xf32>
    %275 = arith.mulf %266, %251 : vector<8x32xf32>
    %276 = arith.addf %274, %275 : vector<8x32xf32>
    %277 = vector.extract_strided_slice %64 {offsets = [32, 128], sizes = [8, 96], strides = [1, 1]} : vector<64x256xf32> to vector<8x96xf32>
    %278 = vector.extract_strided_slice %248 {offsets = [0, 128], sizes = [8, 96], strides = [1, 1]} : vector<8x256xf32> to vector<8x96xf32>
    %279 = vector.extract_strided_slice %246 {offsets = [0, 32], sizes = [8, 32], strides = [1, 1]} : vector<8x64xf32> to vector<8x32xf32>
    %280 = vector.extract_strided_slice %277 {offsets = [0, 0], sizes = [8, 64], strides = [1, 1]} : vector<8x96xf32> to vector<8x64xf32>
    %281 = vector.extract_strided_slice %278 {offsets = [0, 0], sizes = [8, 64], strides = [1, 1]} : vector<8x96xf32> to vector<8x64xf32>
    %282 = arith.addf %280, %281 : vector<8x64xf32>
    %283 = vector.extract_strided_slice %282 {offsets = [0, 0], sizes = [8, 32], strides = [1, 1]} : vector<8x64xf32> to vector<8x32xf32>
    %284 = arith.negf %283 : vector<8x32xf32>
    %285 = math.exp %284 : vector<8x32xf32>
    %cst_46 = arith.constant 1.000000e+00 : f32
    %286 = vector.broadcast %cst_46 : f32 to vector<8x32xf32>
    %287 = arith.addf %286, %285 : vector<8x32xf32>
    %288 = arith.divf %286, %287 : vector<8x32xf32>
    %289 = vector.extract_strided_slice %282 {offsets = [0, 32], sizes = [8, 32], strides = [1, 1]} : vector<8x64xf32> to vector<8x32xf32>
    %290 = arith.negf %289 : vector<8x32xf32>
    %291 = math.exp %290 : vector<8x32xf32>
    %cst_47 = arith.constant 1.000000e+00 : f32
    %292 = vector.broadcast %cst_47 : f32 to vector<8x32xf32>
    %293 = arith.addf %292, %291 : vector<8x32xf32>
    %294 = arith.divf %292, %293 : vector<8x32xf32>
    %295 = vector.extract_strided_slice %277 {offsets = [0, 64], sizes = [8, 32], strides = [1, 1]} : vector<8x96xf32> to vector<8x32xf32>
    %296 = vector.extract_strided_slice %278 {offsets = [0, 64], sizes = [8, 32], strides = [1, 1]} : vector<8x96xf32> to vector<8x32xf32>
    %297 = arith.mulf %288, %296 : vector<8x32xf32>
    %298 = arith.addf %295, %297 : vector<8x32xf32>
    %299 = math.tanh %298 : vector<8x32xf32>
    %cst_48 = arith.constant 1.000000e+00 : f32
    %300 = vector.broadcast %cst_48 : f32 to vector<8x32xf32>
    %301 = arith.subf %300, %294 : vector<8x32xf32>
    %302 = arith.mulf %301, %299 : vector<8x32xf32>
    %303 = arith.mulf %294, %279 : vector<8x32xf32>
    %304 = arith.addf %302, %303 : vector<8x32xf32>
    %305 = tpu.concatenate %276, %304 in 1 : vector<8x32xf32>, vector<8x32xf32> -> vector<8x64xf32>
    %cst_49 = arith.constant dense<0.000000e+00> : vector<8x256xf32>
    %306 = tpu.matmul %305, %65, %cst_49 {dimension_numbers = #tpu.dot_dimension_numbers<[1], [0], [0], [1], [0, 0, 1, 1], [], []>} : vector<8x64xf32>, vector<64x256xf32>, vector<8x256xf32> -> vector<8x256xf32>
    %307 = arith.addf %306, %68 : vector<8x256xf32>
    %308 = vector.extract_strided_slice %64 {offsets = [32, 0], sizes = [8, 96], strides = [1, 1]} : vector<64x256xf32> to vector<8x96xf32>
    %309 = vector.extract_strided_slice %307 {offsets = [0, 0], sizes = [8, 96], strides = [1, 1]} : vector<8x256xf32> to vector<8x96xf32>
    %310 = vector.extract_strided_slice %305 {offsets = [0, 0], sizes = [8, 32], strides = [1, 1]} : vector<8x64xf32> to vector<8x32xf32>
    %311 = vector.extract_strided_slice %308 {offsets = [0, 0], sizes = [8, 64], strides = [1, 1]} : vector<8x96xf32> to vector<8x64xf32>
    %312 = vector.extract_strided_slice %309 {offsets = [0, 0], sizes = [8, 64], strides = [1, 1]} : vector<8x96xf32> to vector<8x64xf32>
    %313 = arith.addf %311, %312 : vector<8x64xf32>
    %314 = vector.extract_strided_slice %313 {offsets = [0, 0], sizes = [8, 32], strides = [1, 1]} : vector<8x64xf32> to vector<8x32xf32>
    %315 = arith.negf %314 : vector<8x32xf32>
    %316 = math.exp %315 : vector<8x32xf32>
    %cst_50 = arith.constant 1.000000e+00 : f32
    %317 = vector.broadcast %cst_50 : f32 to vector<8x32xf32>
    %318 = arith.addf %317, %316 : vector<8x32xf32>
    %319 = arith.divf %317, %318 : vector<8x32xf32>
    %320 = vector.extract_strided_slice %313 {offsets = [0, 32], sizes = [8, 32], strides = [1, 1]} : vector<8x64xf32> to vector<8x32xf32>
    %321 = arith.negf %320 : vector<8x32xf32>
    %322 = math.exp %321 : vector<8x32xf32>
    %cst_51 = arith.constant 1.000000e+00 : f32
    %323 = vector.broadcast %cst_51 : f32 to vector<8x32xf32>
    %324 = arith.addf %323, %322 : vector<8x32xf32>
    %325 = arith.divf %323, %324 : vector<8x32xf32>
    %326 = vector.extract_strided_slice %308 {offsets = [0, 64], sizes = [8, 32], strides = [1, 1]} : vector<8x96xf32> to vector<8x32xf32>
    %327 = vector.extract_strided_slice %309 {offsets = [0, 64], sizes = [8, 32], strides = [1, 1]} : vector<8x96xf32> to vector<8x32xf32>
    %328 = arith.mulf %319, %327 : vector<8x32xf32>
    %329 = arith.addf %326, %328 : vector<8x32xf32>
    %330 = math.tanh %329 : vector<8x32xf32>
    %cst_52 = arith.constant 1.000000e+00 : f32
    %331 = vector.broadcast %cst_52 : f32 to vector<8x32xf32>
    %332 = arith.subf %331, %325 : vector<8x32xf32>
    %333 = arith.mulf %332, %330 : vector<8x32xf32>
    %334 = arith.mulf %325, %310 : vector<8x32xf32>
    %335 = arith.addf %333, %334 : vector<8x32xf32>
    %336 = vector.extract_strided_slice %64 {offsets = [24, 128], sizes = [8, 96], strides = [1, 1]} : vector<64x256xf32> to vector<8x96xf32>
    %337 = vector.extract_strided_slice %307 {offsets = [0, 128], sizes = [8, 96], strides = [1, 1]} : vector<8x256xf32> to vector<8x96xf32>
    %338 = vector.extract_strided_slice %305 {offsets = [0, 32], sizes = [8, 32], strides = [1, 1]} : vector<8x64xf32> to vector<8x32xf32>
    %339 = vector.extract_strided_slice %336 {offsets = [0, 0], sizes = [8, 64], strides = [1, 1]} : vector<8x96xf32> to vector<8x64xf32>
    %340 = vector.extract_strided_slice %337 {offsets = [0, 0], sizes = [8, 64], strides = [1, 1]} : vector<8x96xf32> to vector<8x64xf32>
    %341 = arith.addf %339, %340 : vector<8x64xf32>
    %342 = vector.extract_strided_slice %341 {offsets = [0, 0], sizes = [8, 32], strides = [1, 1]} : vector<8x64xf32> to vector<8x32xf32>
    %343 = arith.negf %342 : vector<8x32xf32>
    %344 = math.exp %343 : vector<8x32xf32>
    %cst_53 = arith.constant 1.000000e+00 : f32
    %345 = vector.broadcast %cst_53 : f32 to vector<8x32xf32>
    %346 = arith.addf %345, %344 : vector<8x32xf32>
    %347 = arith.divf %345, %346 : vector<8x32xf32>
    %348 = vector.extract_strided_slice %341 {offsets = [0, 32], sizes = [8, 32], strides = [1, 1]} : vector<8x64xf32> to vector<8x32xf32>
    %349 = arith.negf %348 : vector<8x32xf32>
    %350 = math.exp %349 : vector<8x32xf32>
    %cst_54 = arith.constant 1.000000e+00 : f32
    %351 = vector.broadcast %cst_54 : f32 to vector<8x32xf32>
    %352 = arith.addf %351, %350 : vector<8x32xf32>
    %353 = arith.divf %351, %352 : vector<8x32xf32>
    %354 = vector.extract_strided_slice %336 {offsets = [0, 64], sizes = [8, 32], strides = [1, 1]} : vector<8x96xf32> to vector<8x32xf32>
    %355 = vector.extract_strided_slice %337 {offsets = [0, 64], sizes = [8, 32], strides = [1, 1]} : vector<8x96xf32> to vector<8x32xf32>
    %356 = arith.mulf %347, %355 : vector<8x32xf32>
    %357 = arith.addf %354, %356 : vector<8x32xf32>
    %358 = math.tanh %357 : vector<8x32xf32>
    %cst_55 = arith.constant 1.000000e+00 : f32
    %359 = vector.broadcast %cst_55 : f32 to vector<8x32xf32>
    %360 = arith.subf %359, %353 : vector<8x32xf32>
    %361 = arith.mulf %360, %358 : vector<8x32xf32>
    %362 = arith.mulf %353, %338 : vector<8x32xf32>
    %363 = arith.addf %361, %362 : vector<8x32xf32>
    %364 = tpu.concatenate %335, %363 in 1 : vector<8x32xf32>, vector<8x32xf32> -> vector<8x64xf32>
    %cst_56 = arith.constant dense<0.000000e+00> : vector<8x256xf32>
    %365 = tpu.matmul %364, %65, %cst_56 {dimension_numbers = #tpu.dot_dimension_numbers<[1], [0], [0], [1], [0, 0, 1, 1], [], []>} : vector<8x64xf32>, vector<64x256xf32>, vector<8x256xf32> -> vector<8x256xf32>
    %366 = arith.addf %365, %68 : vector<8x256xf32>
    %367 = vector.extract_strided_slice %64 {offsets = [40, 0], sizes = [8, 96], strides = [1, 1]} : vector<64x256xf32> to vector<8x96xf32>
    %368 = vector.extract_strided_slice %366 {offsets = [0, 0], sizes = [8, 96], strides = [1, 1]} : vector<8x256xf32> to vector<8x96xf32>
    %369 = vector.extract_strided_slice %364 {offsets = [0, 0], sizes = [8, 32], strides = [1, 1]} : vector<8x64xf32> to vector<8x32xf32>
    %370 = vector.extract_strided_slice %367 {offsets = [0, 0], sizes = [8, 64], strides = [1, 1]} : vector<8x96xf32> to vector<8x64xf32>
    %371 = vector.extract_strided_slice %368 {offsets = [0, 0], sizes = [8, 64], strides = [1, 1]} : vector<8x96xf32> to vector<8x64xf32>
    %372 = arith.addf %370, %371 : vector<8x64xf32>
    %373 = vector.extract_strided_slice %372 {offsets = [0, 0], sizes = [8, 32], strides = [1, 1]} : vector<8x64xf32> to vector<8x32xf32>
    %374 = arith.negf %373 : vector<8x32xf32>
    %375 = math.exp %374 : vector<8x32xf32>
    %cst_57 = arith.constant 1.000000e+00 : f32
    %376 = vector.broadcast %cst_57 : f32 to vector<8x32xf32>
    %377 = arith.addf %376, %375 : vector<8x32xf32>
    %378 = arith.divf %376, %377 : vector<8x32xf32>
    %379 = vector.extract_strided_slice %372 {offsets = [0, 32], sizes = [8, 32], strides = [1, 1]} : vector<8x64xf32> to vector<8x32xf32>
    %380 = arith.negf %379 : vector<8x32xf32>
    %381 = math.exp %380 : vector<8x32xf32>
    %cst_58 = arith.constant 1.000000e+00 : f32
    %382 = vector.broadcast %cst_58 : f32 to vector<8x32xf32>
    %383 = arith.addf %382, %381 : vector<8x32xf32>
    %384 = arith.divf %382, %383 : vector<8x32xf32>
    %385 = vector.extract_strided_slice %367 {offsets = [0, 64], sizes = [8, 32], strides = [1, 1]} : vector<8x96xf32> to vector<8x32xf32>
    %386 = vector.extract_strided_slice %368 {offsets = [0, 64], sizes = [8, 32], strides = [1, 1]} : vector<8x96xf32> to vector<8x32xf32>
    %387 = arith.mulf %378, %386 : vector<8x32xf32>
    %388 = arith.addf %385, %387 : vector<8x32xf32>
    %389 = math.tanh %388 : vector<8x32xf32>
    %cst_59 = arith.constant 1.000000e+00 : f32
    %390 = vector.broadcast %cst_59 : f32 to vector<8x32xf32>
    %391 = arith.subf %390, %384 : vector<8x32xf32>
    %392 = arith.mulf %391, %389 : vector<8x32xf32>
    %393 = arith.mulf %384, %369 : vector<8x32xf32>
    %394 = arith.addf %392, %393 : vector<8x32xf32>
    %395 = vector.extract_strided_slice %64 {offsets = [16, 128], sizes = [8, 96], strides = [1, 1]} : vector<64x256xf32> to vector<8x96xf32>
    %396 = vector.extract_strided_slice %366 {offsets = [0, 128], sizes = [8, 96], strides = [1, 1]} : vector<8x256xf32> to vector<8x96xf32>
    %397 = vector.extract_strided_slice %364 {offsets = [0, 32], sizes = [8, 32], strides = [1, 1]} : vector<8x64xf32> to vector<8x32xf32>
    %398 = vector.extract_strided_slice %395 {offsets = [0, 0], sizes = [8, 64], strides = [1, 1]} : vector<8x96xf32> to vector<8x64xf32>
    %399 = vector.extract_strided_slice %396 {offsets = [0, 0], sizes = [8, 64], strides = [1, 1]} : vector<8x96xf32> to vector<8x64xf32>
    %400 = arith.addf %398, %399 : vector<8x64xf32>
    %401 = vector.extract_strided_slice %400 {offsets = [0, 0], sizes = [8, 32], strides = [1, 1]} : vector<8x64xf32> to vector<8x32xf32>
    %402 = arith.negf %401 : vector<8x32xf32>
    %403 = math.exp %402 : vector<8x32xf32>
    %cst_60 = arith.constant 1.000000e+00 : f32
    %404 = vector.broadcast %cst_60 : f32 to vector<8x32xf32>
    %405 = arith.addf %404, %403 : vector<8x32xf32>
    %406 = arith.divf %404, %405 : vector<8x32xf32>
    %407 = vector.extract_strided_slice %400 {offsets = [0, 32], sizes = [8, 32], strides = [1, 1]} : vector<8x64xf32> to vector<8x32xf32>
    %408 = arith.negf %407 : vector<8x32xf32>
    %409 = math.exp %408 : vector<8x32xf32>
    %cst_61 = arith.constant 1.000000e+00 : f32
    %410 = vector.broadcast %cst_61 : f32 to vector<8x32xf32>
    %411 = arith.addf %410, %409 : vector<8x32xf32>
    %412 = arith.divf %410, %411 : vector<8x32xf32>
    %413 = vector.extract_strided_slice %395 {offsets = [0, 64], sizes = [8, 32], strides = [1, 1]} : vector<8x96xf32> to vector<8x32xf32>
    %414 = vector.extract_strided_slice %396 {offsets = [0, 64], sizes = [8, 32], strides = [1, 1]} : vector<8x96xf32> to vector<8x32xf32>
    %415 = arith.mulf %406, %414 : vector<8x32xf32>
    %416 = arith.addf %413, %415 : vector<8x32xf32>
    %417 = math.tanh %416 : vector<8x32xf32>
    %cst_62 = arith.constant 1.000000e+00 : f32
    %418 = vector.broadcast %cst_62 : f32 to vector<8x32xf32>
    %419 = arith.subf %418, %412 : vector<8x32xf32>
    %420 = arith.mulf %419, %417 : vector<8x32xf32>
    %421 = arith.mulf %412, %397 : vector<8x32xf32>
    %422 = arith.addf %420, %421 : vector<8x32xf32>
    %423 = tpu.concatenate %394, %422 in 1 : vector<8x32xf32>, vector<8x32xf32> -> vector<8x64xf32>
    %cst_63 = arith.constant dense<0.000000e+00> : vector<8x256xf32>
    %424 = tpu.matmul %423, %65, %cst_63 {dimension_numbers = #tpu.dot_dimension_numbers<[1], [0], [0], [1], [0, 0, 1, 1], [], []>} : vector<8x64xf32>, vector<64x256xf32>, vector<8x256xf32> -> vector<8x256xf32>
    %425 = arith.addf %424, %68 : vector<8x256xf32>
    %426 = vector.extract_strided_slice %64 {offsets = [48, 0], sizes = [8, 96], strides = [1, 1]} : vector<64x256xf32> to vector<8x96xf32>
    %427 = vector.extract_strided_slice %425 {offsets = [0, 0], sizes = [8, 96], strides = [1, 1]} : vector<8x256xf32> to vector<8x96xf32>
    %428 = vector.extract_strided_slice %423 {offsets = [0, 0], sizes = [8, 32], strides = [1, 1]} : vector<8x64xf32> to vector<8x32xf32>
    %429 = vector.extract_strided_slice %426 {offsets = [0, 0], sizes = [8, 64], strides = [1, 1]} : vector<8x96xf32> to vector<8x64xf32>
    %430 = vector.extract_strided_slice %427 {offsets = [0, 0], sizes = [8, 64], strides = [1, 1]} : vector<8x96xf32> to vector<8x64xf32>
    %431 = arith.addf %429, %430 : vector<8x64xf32>
    %432 = vector.extract_strided_slice %431 {offsets = [0, 0], sizes = [8, 32], strides = [1, 1]} : vector<8x64xf32> to vector<8x32xf32>
    %433 = arith.negf %432 : vector<8x32xf32>
    %434 = math.exp %433 : vector<8x32xf32>
    %cst_64 = arith.constant 1.000000e+00 : f32
    %435 = vector.broadcast %cst_64 : f32 to vector<8x32xf32>
    %436 = arith.addf %435, %434 : vector<8x32xf32>
    %437 = arith.divf %435, %436 : vector<8x32xf32>
    %438 = vector.extract_strided_slice %431 {offsets = [0, 32], sizes = [8, 32], strides = [1, 1]} : vector<8x64xf32> to vector<8x32xf32>
    %439 = arith.negf %438 : vector<8x32xf32>
    %440 = math.exp %439 : vector<8x32xf32>
    %cst_65 = arith.constant 1.000000e+00 : f32
    %441 = vector.broadcast %cst_65 : f32 to vector<8x32xf32>
    %442 = arith.addf %441, %440 : vector<8x32xf32>
    %443 = arith.divf %441, %442 : vector<8x32xf32>
    %444 = vector.extract_strided_slice %426 {offsets = [0, 64], sizes = [8, 32], strides = [1, 1]} : vector<8x96xf32> to vector<8x32xf32>
    %445 = vector.extract_strided_slice %427 {offsets = [0, 64], sizes = [8, 32], strides = [1, 1]} : vector<8x96xf32> to vector<8x32xf32>
    %446 = arith.mulf %437, %445 : vector<8x32xf32>
    %447 = arith.addf %444, %446 : vector<8x32xf32>
    %448 = math.tanh %447 : vector<8x32xf32>
    %cst_66 = arith.constant 1.000000e+00 : f32
    %449 = vector.broadcast %cst_66 : f32 to vector<8x32xf32>
    %450 = arith.subf %449, %443 : vector<8x32xf32>
    %451 = arith.mulf %450, %448 : vector<8x32xf32>
    %452 = arith.mulf %443, %428 : vector<8x32xf32>
    %453 = arith.addf %451, %452 : vector<8x32xf32>
    %454 = vector.extract_strided_slice %64 {offsets = [8, 128], sizes = [8, 96], strides = [1, 1]} : vector<64x256xf32> to vector<8x96xf32>
    %455 = vector.extract_strided_slice %425 {offsets = [0, 128], sizes = [8, 96], strides = [1, 1]} : vector<8x256xf32> to vector<8x96xf32>
    %456 = vector.extract_strided_slice %423 {offsets = [0, 32], sizes = [8, 32], strides = [1, 1]} : vector<8x64xf32> to vector<8x32xf32>
    %457 = vector.extract_strided_slice %454 {offsets = [0, 0], sizes = [8, 64], strides = [1, 1]} : vector<8x96xf32> to vector<8x64xf32>
    %458 = vector.extract_strided_slice %455 {offsets = [0, 0], sizes = [8, 64], strides = [1, 1]} : vector<8x96xf32> to vector<8x64xf32>
    %459 = arith.addf %457, %458 : vector<8x64xf32>
    %460 = vector.extract_strided_slice %459 {offsets = [0, 0], sizes = [8, 32], strides = [1, 1]} : vector<8x64xf32> to vector<8x32xf32>
    %461 = arith.negf %460 : vector<8x32xf32>
    %462 = math.exp %461 : vector<8x32xf32>
    %cst_67 = arith.constant 1.000000e+00 : f32
    %463 = vector.broadcast %cst_67 : f32 to vector<8x32xf32>
    %464 = arith.addf %463, %462 : vector<8x32xf32>
    %465 = arith.divf %463, %464 : vector<8x32xf32>
    %466 = vector.extract_strided_slice %459 {offsets = [0, 32], sizes = [8, 32], strides = [1, 1]} : vector<8x64xf32> to vector<8x32xf32>
    %467 = arith.negf %466 : vector<8x32xf32>
    %468 = math.exp %467 : vector<8x32xf32>
    %cst_68 = arith.constant 1.000000e+00 : f32
    %469 = vector.broadcast %cst_68 : f32 to vector<8x32xf32>
    %470 = arith.addf %469, %468 : vector<8x32xf32>
    %471 = arith.divf %469, %470 : vector<8x32xf32>
    %472 = vector.extract_strided_slice %454 {offsets = [0, 64], sizes = [8, 32], strides = [1, 1]} : vector<8x96xf32> to vector<8x32xf32>
    %473 = vector.extract_strided_slice %455 {offsets = [0, 64], sizes = [8, 32], strides = [1, 1]} : vector<8x96xf32> to vector<8x32xf32>
    %474 = arith.mulf %465, %473 : vector<8x32xf32>
    %475 = arith.addf %472, %474 : vector<8x32xf32>
    %476 = math.tanh %475 : vector<8x32xf32>
    %cst_69 = arith.constant 1.000000e+00 : f32
    %477 = vector.broadcast %cst_69 : f32 to vector<8x32xf32>
    %478 = arith.subf %477, %471 : vector<8x32xf32>
    %479 = arith.mulf %478, %476 : vector<8x32xf32>
    %480 = arith.mulf %471, %456 : vector<8x32xf32>
    %481 = arith.addf %479, %480 : vector<8x32xf32>
    %482 = tpu.concatenate %453, %481 in 1 : vector<8x32xf32>, vector<8x32xf32> -> vector<8x64xf32>
    %cst_70 = arith.constant dense<0.000000e+00> : vector<8x256xf32>
    %483 = tpu.matmul %482, %65, %cst_70 {dimension_numbers = #tpu.dot_dimension_numbers<[1], [0], [0], [1], [0, 0, 1, 1], [], []>} : vector<8x64xf32>, vector<64x256xf32>, vector<8x256xf32> -> vector<8x256xf32>
    %484 = arith.addf %483, %68 : vector<8x256xf32>
    %485 = vector.extract_strided_slice %64 {offsets = [56, 0], sizes = [8, 96], strides = [1, 1]} : vector<64x256xf32> to vector<8x96xf32>
    %486 = vector.extract_strided_slice %484 {offsets = [0, 0], sizes = [8, 96], strides = [1, 1]} : vector<8x256xf32> to vector<8x96xf32>
    %487 = vector.extract_strided_slice %482 {offsets = [0, 0], sizes = [8, 32], strides = [1, 1]} : vector<8x64xf32> to vector<8x32xf32>
    %488 = vector.extract_strided_slice %485 {offsets = [0, 0], sizes = [8, 64], strides = [1, 1]} : vector<8x96xf32> to vector<8x64xf32>
    %489 = vector.extract_strided_slice %486 {offsets = [0, 0], sizes = [8, 64], strides = [1, 1]} : vector<8x96xf32> to vector<8x64xf32>
    %490 = arith.addf %488, %489 : vector<8x64xf32>
    %491 = vector.extract_strided_slice %490 {offsets = [0, 0], sizes = [8, 32], strides = [1, 1]} : vector<8x64xf32> to vector<8x32xf32>
    %492 = arith.negf %491 : vector<8x32xf32>
    %493 = math.exp %492 : vector<8x32xf32>
    %cst_71 = arith.constant 1.000000e+00 : f32
    %494 = vector.broadcast %cst_71 : f32 to vector<8x32xf32>
    %495 = arith.addf %494, %493 : vector<8x32xf32>
    %496 = arith.divf %494, %495 : vector<8x32xf32>
    %497 = vector.extract_strided_slice %490 {offsets = [0, 32], sizes = [8, 32], strides = [1, 1]} : vector<8x64xf32> to vector<8x32xf32>
    %498 = arith.negf %497 : vector<8x32xf32>
    %499 = math.exp %498 : vector<8x32xf32>
    %cst_72 = arith.constant 1.000000e+00 : f32
    %500 = vector.broadcast %cst_72 : f32 to vector<8x32xf32>
    %501 = arith.addf %500, %499 : vector<8x32xf32>
    %502 = arith.divf %500, %501 : vector<8x32xf32>
    %503 = vector.extract_strided_slice %485 {offsets = [0, 64], sizes = [8, 32], strides = [1, 1]} : vector<8x96xf32> to vector<8x32xf32>
    %504 = vector.extract_strided_slice %486 {offsets = [0, 64], sizes = [8, 32], strides = [1, 1]} : vector<8x96xf32> to vector<8x32xf32>
    %505 = arith.mulf %496, %504 : vector<8x32xf32>
    %506 = arith.addf %503, %505 : vector<8x32xf32>
    %507 = math.tanh %506 : vector<8x32xf32>
    %cst_73 = arith.constant 1.000000e+00 : f32
    %508 = vector.broadcast %cst_73 : f32 to vector<8x32xf32>
    %509 = arith.subf %508, %502 : vector<8x32xf32>
    %510 = arith.mulf %509, %507 : vector<8x32xf32>
    %511 = arith.mulf %502, %487 : vector<8x32xf32>
    %512 = arith.addf %510, %511 : vector<8x32xf32>
    %513 = vector.extract_strided_slice %64 {offsets = [0, 128], sizes = [8, 96], strides = [1, 1]} : vector<64x256xf32> to vector<8x96xf32>
    %514 = vector.extract_strided_slice %484 {offsets = [0, 128], sizes = [8, 96], strides = [1, 1]} : vector<8x256xf32> to vector<8x96xf32>
    %515 = vector.extract_strided_slice %482 {offsets = [0, 32], sizes = [8, 32], strides = [1, 1]} : vector<8x64xf32> to vector<8x32xf32>
    %516 = vector.extract_strided_slice %513 {offsets = [0, 0], sizes = [8, 64], strides = [1, 1]} : vector<8x96xf32> to vector<8x64xf32>
    %517 = vector.extract_strided_slice %514 {offsets = [0, 0], sizes = [8, 64], strides = [1, 1]} : vector<8x96xf32> to vector<8x64xf32>
    %518 = arith.addf %516, %517 : vector<8x64xf32>
    %519 = vector.extract_strided_slice %518 {offsets = [0, 0], sizes = [8, 32], strides = [1, 1]} : vector<8x64xf32> to vector<8x32xf32>
    %520 = arith.negf %519 : vector<8x32xf32>
    %521 = math.exp %520 : vector<8x32xf32>
    %cst_74 = arith.constant 1.000000e+00 : f32
    %522 = vector.broadcast %cst_74 : f32 to vector<8x32xf32>
    %523 = arith.addf %522, %521 : vector<8x32xf32>
    %524 = arith.divf %522, %523 : vector<8x32xf32>
    %525 = vector.extract_strided_slice %518 {offsets = [0, 32], sizes = [8, 32], strides = [1, 1]} : vector<8x64xf32> to vector<8x32xf32>
    %526 = arith.negf %525 : vector<8x32xf32>
    %527 = math.exp %526 : vector<8x32xf32>
    %cst_75 = arith.constant 1.000000e+00 : f32
    %528 = vector.broadcast %cst_75 : f32 to vector<8x32xf32>
    %529 = arith.addf %528, %527 : vector<8x32xf32>
    %530 = arith.divf %528, %529 : vector<8x32xf32>
    %531 = vector.extract_strided_slice %513 {offsets = [0, 64], sizes = [8, 32], strides = [1, 1]} : vector<8x96xf32> to vector<8x32xf32>
    %532 = vector.extract_strided_slice %514 {offsets = [0, 64], sizes = [8, 32], strides = [1, 1]} : vector<8x96xf32> to vector<8x32xf32>
    %533 = arith.mulf %524, %532 : vector<8x32xf32>
    %534 = arith.addf %531, %533 : vector<8x32xf32>
    %535 = math.tanh %534 : vector<8x32xf32>
    %cst_76 = arith.constant 1.000000e+00 : f32
    %536 = vector.broadcast %cst_76 : f32 to vector<8x32xf32>
    %537 = arith.subf %536, %530 : vector<8x32xf32>
    %538 = arith.mulf %537, %535 : vector<8x32xf32>
    %539 = arith.mulf %530, %515 : vector<8x32xf32>
    %540 = arith.addf %538, %539 : vector<8x32xf32>
    %541 = tpu.concatenate %99, %540 in 1 : vector<8x32xf32>, vector<8x32xf32> -> vector<8x64xf32>
    %542 = tpu.concatenate %158, %481 in 1 : vector<8x32xf32>, vector<8x32xf32> -> vector<8x64xf32>
    %543 = tpu.concatenate %217, %422 in 1 : vector<8x32xf32>, vector<8x32xf32> -> vector<8x64xf32>
    %544 = tpu.concatenate %276, %363 in 1 : vector<8x32xf32>, vector<8x32xf32> -> vector<8x64xf32>
    %545 = tpu.concatenate %335, %304 in 1 : vector<8x32xf32>, vector<8x32xf32> -> vector<8x64xf32>
    %546 = tpu.concatenate %394, %245 in 1 : vector<8x32xf32>, vector<8x32xf32> -> vector<8x64xf32>
    %547 = tpu.concatenate %453, %186 in 1 : vector<8x32xf32>, vector<8x32xf32> -> vector<8x64xf32>
    %548 = tpu.concatenate %512, %127 in 1 : vector<8x32xf32>, vector<8x32xf32> -> vector<8x64xf32>
    %549 = tpu.concatenate %541, %542, %543, %544, %545, %546, %547, %548 in 0 : vector<8x64xf32>, vector<8x64xf32>, vector<8x64xf32>, vector<8x64xf32>, vector<8x64xf32>, vector<8x64xf32>, vector<8x64xf32>, vector<8x64xf32> -> vector<64x64xf32>
    %cst_77 = arith.constant 0.000000e+00 : f32
    %550 = vector.broadcast %cst_77 : f32 to vector<64x64xf32>
    %551 = tpu.concatenate %549, %550 in 1 : vector<64x64xf32>, vector<64x64xf32> -> vector<64x128xf32>
    %c0_78 = arith.constant 0 : index
    %c0_79 = arith.constant 0 : index
    %c0_80 = arith.constant 0 : index
    %552 = vector.load %arg9[%c0_78, %c0_79, %c0_80] : memref<1x64x128xf32, #tpu.memory_space<vmem>>, vector<1x64x128xf32>
    %553 = vector.shape_cast %552 : vector<1x64x128xf32> to vector<64x128xf32>
    %554 = vector.shape_cast %551 : vector<64x128xf32> to vector<1x64x128xf32>
    tpu.vector_store %arg9[%c0_78, %c0_79, %c0_80], %554 {strides = array<i32>} : memref<1x64x128xf32, #tpu.memory_space<vmem>>, vector<1x64x128xf32>,
    return
  }
  func.func @transform_0(%arg0: i32) -> (i32, i32, i32) {
    %c0_i32 = arith.constant 0 : i32
    %c0_i32_0 = arith.constant 0 : i32
    %c0_i32_1 = arith.constant 0 : i32
    return %arg0, %c0_i32, %c0_i32_0 : i32, i32, i32
  }
  func.func @transform_1(%arg0: i32) -> (i32, i32, i32) {
    %c0_i32 = arith.constant 0 : i32
    %c0_i32_0 = arith.constant 0 : i32
    %c0_i32_1 = arith.constant 0 : i32
    return %arg0, %c0_i32, %c0_i32_0 : i32, i32, i32
  }
  func.func @transform_2(%arg0: i32) -> (i32, i32) {
    %c0_i32 = arith.constant 0 : i32
    %c0_i32_0 = arith.constant 0 : i32
    %c0_i32_1 = arith.constant 0 : i32
    return %c0_i32, %c0_i32_0 : i32, i32
  }
  func.func @transform_3(%arg0: i32) -> (i32, i32) {
    %c0_i32 = arith.constant 0 : i32
    %c0_i32_0 = arith.constant 0 : i32
    %c0_i32_1 = arith.constant 0 : i32
    return %c0_i32, %c0_i32_0 : i32, i32
  }
  func.func @transform_4(%arg0: i32) -> (i32, i32) {
    %c0_i32 = arith.constant 0 : i32
    %c0_i32_0 = arith.constant 0 : i32
    %c0_i32_1 = arith.constant 0 : i32
    return %c0_i32, %c0_i32_0 : i32, i32
  }
  func.func @transform_5(%arg0: i32) -> (i32, i32) {
    %c0_i32 = arith.constant 0 : i32
    %c0_i32_0 = arith.constant 0 : i32
    %c0_i32_1 = arith.constant 0 : i32
    return %c0_i32, %c0_i32_0 : i32, i32
  }
  func.func @transform_6(%arg0: i32) -> (i32, i32) {
    %c0_i32 = arith.constant 0 : i32
    %c0_i32_0 = arith.constant 0 : i32
    %c0_i32_1 = arith.constant 0 : i32
    return %c0_i32, %c0_i32_0 : i32, i32
  }
  func.func @transform_7(%arg0: i32) -> (i32, i32) {
    %c0_i32 = arith.constant 0 : i32
    %c0_i32_0 = arith.constant 0 : i32
    %c0_i32_1 = arith.constant 0 : i32
    return %c0_i32, %c0_i32_0 : i32, i32
  }
  func.func @transform_8(%arg0: i32) -> (i32, i32, i32) {
    %c0_i32 = arith.constant 0 : i32
    %c0_i32_0 = arith.constant 0 : i32
    %c0_i32_1 = arith.constant 0 : i32
    return %arg0, %c0_i32, %c0_i32_0 : i32, i32, i32
  }
}

</mosaic_0001>

<bundles_post_ra>
// kernel: _lambda_.1
= control target key start
LH: loop header
LB: loop body
LE: loop exit
PB: predicated region body
PF: predicated region fallthrough
CT: control target
= control target key end

     0   :  { %vm206_vm0 = vcmask 130048   ;;  %v737_v25 = vlaneseq  ;;  %s2701_s11 = smov 32   ;;  %s2703_s19 = smov 16   ;;  %vm981_vm1 = vcmask 261120   ;;  %vm1014_vm2 = vcmask 392192   ;;  %s3813_s2 = inlined_call_operand.vmem [shape: bf16[16,80], index: 2, kind: input, shape index: {}]   ;;  %s3814_s1 = inlined_call_operand.vmem [shape: bf16[1,384,16], index: 1, kind: input, shape index: {}]   ;;  %s3815_s3 = inlined_call_operand.vmem [shape: f32[2,16], index: 3, kind: input, shape index: {}]   ;;  %s3816_s4 = inlined_call_operand.vmem [shape: f32[48,256], index: 4, kind: input, shape index: {}]   ;;  %s3817_s6 = inlined_call_operand.vmem [shape: f32[64,256], index: 6, kind: input, shape index: {}]   ;;  %s3818_s0 = inlined_call_operand.vmem [shape: f32[1,64,16], index: 0, kind: input, shape index: {}]   ;;  %s3819_s5 = inlined_call_operand.vmem [shape: f32[1,256], index: 5, kind: input, shape index: {}]   ;;  %s3820_s7 = inlined_call_operand.vmem [shape: f32[1,256], index: 7, kind: input, shape index: {}]   ;;  %s3821_s8 = inlined_call_operand.vmem [shape: f32[1,64,128], index: 8, kind: output, shape index: {}]  }
   0x1   :  { %v2578_v0 = vld [vmem:[%s3813_s2] sm:$0xff]   ;;  %v2580_v2 = vld [vmem:[%s3814_s1 + $0x8] sm:$0xff]   ;;  %v2581_v3 = vld [vmem:[%s3814_s1 + $0x10] sm:$0xff]   ;;  %s2704_s13 = smov 64   ;;  %vm1180_vm3 = vcmask 523264  }
   0x2   :  { %v2579_v1 = vld [vmem:[%s3814_s1] sm:$0xff]   ;;  %2382 = vmatprep.subr.bf16.mxu0 %v2578_v0  ;;  %v2582_v4 = vld [vmem:[%s3814_s1 + $0x18] sm:$0xff]   ;;  %v2584_v6 = vld [vmem:[%s3814_s1 + $0x28] sm:$0xff]   ;;  %v2849_v26 = vshrl.u32 %v737_v25, 7 }
   0x3   :  { %2383 = vmatpush3.bf16.msra.mxu0 %v2578_v0  ;;  %2384 = vmatprep.mubr.msk.bf16.mxu0 %vm206_vm0, %v2579_v1  ;;  %v2583_v5 = vld [vmem:[%s3814_s1 + $0x20] sm:$0xff]   ;;  %v2585_v7 = vld [vmem:[%s3814_s1 + $0x30] sm:$0xff]   ;;  %v2586_v8 = vld [vmem:[%s3814_s1 + $0x38] sm:$0xff]  }
   0x4   :  { %v2587_v9 = vld [vmem:[%s3814_s1 + $0x40] sm:$0xff]   ;;  %v2588_v10 = vld [vmem:[%s3814_s1 + $0x48] sm:$0xff]   ;;  %v2589_v11 = vld [vmem:[%s3814_s1 + $0x50] sm:$0xff]   ;;  %v2852_v27 = vsub.s32 0, %v2849_v26 }
   0x5   :  { %v2590_v12 = vld [vmem:[%s3814_s1 + $0x58] sm:$0xff]   ;;  %v2591_v13 = vld [vmem:[%s3814_s1 + $0x60] sm:$0xff]   ;;  %v2592_v14 = vld [vmem:[%s3814_s1 + $0x68] sm:$0xff]  }
   0x6   :  { %2385 = vmatmul.mubr.msk.bf16.vlgmr.msra.gmra.mrb[0].mxu0 %vm206_vm0, %v2580_v2  ;;  %v2593_v15 = vld [vmem:[%s3814_s1 + $0x70] sm:$0xff]   ;;  %v2594_v16 = vld [vmem:[%s3814_s1 + $0x78] sm:$0xff]   ;;  %v2595_v17 = vld [vmem:[%s3814_s1 + $0x80] sm:$0xff]   ;;  %3841 = vst [vmem:[#allocation2_spill] sm:$0xff] %v2852_v27 }
   0x7   :  { %2388 = vmatprep.mubr.msk.bf16.mxu0 %vm206_vm0, %v2581_v3  ;;  %v2596_v18 = vld [vmem:[%s3814_s1 + $0x88] sm:$0xff]   ;;  %v2597_v19 = vld [vmem:[%s3814_s1 + $0x90] sm:$0xff]   ;;  %v2598_v20 = vld [vmem:[%s3814_s1 + $0x98] sm:$0xff]  }
   0x8   :  { %v2599_v21 = vld [vmem:[%s3814_s1 + $0xa0] sm:$0xff]   ;;  %v2600_v22 = vld [vmem:[%s3814_s1 + $0xa8] sm:$0xff]   ;;  %v2601_v23 = vld [vmem:[%s3814_s1 + $0xb0] sm:$0xff]  }
   0x9   :  { %v2602_v24 = vld [vmem:[%s3814_s1 + $0xb8] sm:$0xff]   ;;  %v2857_v28 = vld [vmem:[%s3815_s3] sm:$0x3]  ;;  %s2699_s1 = smov 112   ;;  %s2700_s3 = smov 96   ;;  %v992_v25 = vld [vmem:[%s3816_s4 + $0x10] sm:$0xff] }
   0xa   :  { %v2861_v29 = vrot.slane %v2857_v28, %v2852_v27 }
   0xe   :  { %2389 = vmatmul.mubr.msk.bf16.gmra.mrb[4].mxu0 %vm206_vm0, %v2582_v4 }
   0xf   :  { %2392 = vmatprep.mubr.msk.bf16.mxu0 %vm206_vm0, %v2583_v5 }
  0x16   :  { %2393 = vmatmul.mubr.msk.bf16.gmra.mrb[8].mxu0 %vm206_vm0, %v2584_v6 }
  0x17   :  { %2396 = vmatprep.mubr.msk.bf16.mxu0 %vm206_vm0, %v2585_v7 }
  0x1e   :  { %2397 = vmatmul.mubr.msk.bf16.gmra.mrb[12].mxu0 %vm206_vm0, %v2586_v8 }
  0x1f   :  { %2400 = vmatprep.mubr.msk.bf16.mxu0 %vm206_vm0, %v2587_v9 }
  0x26   :  { %2401 = vmatmul.mubr.msk.bf16.gmra.mrb[16].mxu0 %vm206_vm0, %v2588_v10 }
  0x27   :  { %2404 = vmatprep.mubr.msk.bf16.mxu0 %vm206_vm0, %v2589_v11 }
  0x2e   :  { %2405 = vmatmul.mubr.msk.bf16.gmra.mrb[20].mxu0 %vm206_vm0, %v2590_v12 }
  0x2f   :  { %2408 = vmatprep.mubr.msk.bf16.mxu0 %vm206_vm0, %v2591_v13 }
  0x36   :  { %2409 = vmatmul.mubr.msk.bf16.gmra.mrb[24].mxu0 %vm206_vm0, %v2592_v14  ;;  %v3038_v14 = vsub.s32 1, %v2849_v26  ;;  %v995_v26 = vld [vmem:[%s3816_s4 + $0x28] sm:$0xff] }
  0x37   :  { %2412 = vmatprep.mubr.msk.bf16.mxu0 %vm206_vm0, %v2593_v15 }
  0x38   :  { %3849 = vst [vmem:[#allocation10_spill] sm:$0xff] %v3038_v14  ;;  %v912_v15 = vrot.slane %v2857_v28, %v3038_v14  ;;  %v997_v28 = vld [vmem:[%s3816_s4 + $0x38] sm:$0xff] }
  0x3e   :  { %2413 = vmatmul.mubr.msk.bf16.gmra.mrb[28].mxu0 %vm206_vm0, %v2594_v16 }
  0x3f   :  { %2416 = vmatprep.mubr.msk.bf16.mxu0 %vm206_vm0, %v2595_v17 }
  0x46   :  { %2417 = vmatmul.mubr.msk.bf16.gmra.mrb[32].mxu0 %vm206_vm0, %v2596_v18 }
  0x47   :  { %2420 = vmatprep.mubr.msk.bf16.mxu0 %vm206_vm0, %v2597_v19 }
  0x4e   :  { %2421 = vmatmul.mubr.msk.bf16.gmra.mrb[36].mxu0 %vm206_vm0, %v2598_v20 }
  0x4f   :  { %2424 = vmatprep.mubr.msk.bf16.mxu0 %vm206_vm0, %v2599_v21  ;;  %v991_v21 = vld [vmem:[%s3816_s4 + $0x8] sm:$0xff] }
  0x56   :  { %2425 = vmatmul.mubr.msk.bf16.gmra.mrb[40].mxu0 %vm206_vm0, %v2600_v22  ;;  %v993_v22 = vld [vmem:[%s3816_s4 + $0x18] sm:$0xff] }
  0x57   :  { %2428 = vmatprep.mubr.msk.bf16.mxu0 %vm206_vm0, %v2601_v23  ;;  %v990_v23 = vld [vmem:[%s3816_s4] sm:$0xff] }
  0x5e   :  { %2429 = vmatmul.mubr.msk.bf16.gmra.mrb[44].mxu0 %vm206_vm0, %v2602_v24  ;;  %v2432_v24 = vpack.c.bf16 %v993_v22, %v991_v21 }
  0x60   :  { %2433 = vmatprep.subr.bf16.mxu1 %v2432_v24 }
  0xd9   :  { %v2863_v30 = vpop.f32.mrb[0].mxu0 }
  0xda   :  { %v2865_v31 = vpop.f32.mrb[1].mxu0 }
  0xdb   :  { %v2867_v32 = vpop.f32.mrb[2].mxu0 }
  0xdc   :  { %v2869_v33 = vpop.f32.mrb[3].mxu0 }
  0xe1   :  { %v2871_v34 = vpop.f32.mrb[4].mxu0 }
  0xe2   :  { %v2873_v35 = vpop.f32.mrb[5].mxu0 }
  0xe3   :  { %v2875_v36 = vpop.f32.mrb[6].mxu0 }
  0xe4   :  { %v2877_v37 = vpop.f32.mrb[7].mxu0 }
  0xe9   :  { %v2879_v38 = vpop.f32.mrb[8].mxu0 }
  0xea   :  { %517 = vrot.lane.b32.xlu0 %v2879_v38, %s2699_s1  ;;  %v2883_v39 = vpop.f32.mrb[9].mxu0 }
  0xeb   :  { %v2885_v40 = vpop.f32.mrb[10].mxu0 }
  0xec   :  { %519 = vrot.lane.b32.xlu1 %v2885_v40, %s2699_s1  ;;  %v2889_v41 = vpop.f32.mrb[11].mxu0 }
  0xee   :  { %513 = vrot.lane.b32.xlu0 %v2883_v39, %s2699_s1 }
  0xf0   :  { %515 = vrot.lane.b32.xlu1 %v2889_v41, %s2699_s1 }
  0xf1   :  { %v2895_v42 = vpop.f32.mrb[12].mxu0 }
  0xf2   :  { %525 = vrot.lane.b32.xlu0 %v2895_v42, %s2699_s1  ;;  %v2899_v43 = vpop.f32.mrb[13].mxu0 }
  0xf3   :  { %v2901_v44 = vpop.f32.mrb[14].mxu0 }
  0xf4   :  { %527 = vrot.lane.b32.xlu1 %v2901_v44, %s2699_s1  ;;  %v2905_v45 = vpop.f32.mrb[15].mxu0 }
  0xf6   :  { %521 = vrot.lane.b32.xlu0 %v2899_v43, %s2699_s1 }
  0xf8   :  { %523 = vrot.lane.b32.xlu1 %v2905_v45, %s2699_s1 }
  0xf9   :  { %v2911_v46 = vpop.f32.mrb[16].mxu0 }
  0xfa   :  { %v2913_v47 = vpop.f32.mrb[17].mxu0 }
  0xfb   :  { %553 = vrot.lane.b32.xlu0 %v2913_v47, %s2699_s1  ;;  %v2917_v48 = vpop.f32.mrb[18].mxu0 }
  0xfc   :  { %557 = vrot.lane.b32.xlu1 %v2911_v46, %s2699_s1  ;;  %v2921_v49 = vpop.f32.mrb[19].mxu0 }
  0xff   :  { %559 = vrot.lane.b32.xlu0 %v2917_v48, %s2699_s1 }
 0x101   :  { %v2925_v50 = vpop.f32.mrb[20].mxu0 }
 0x102   :  { %565 = vrot.lane.b32.xlu1 %v2925_v50, %s2699_s1  ;;  %v2929_v51 = vpop.f32.mrb[21].mxu0 }
 0x103   :  { %555 = vrot.lane.b32.xlu0 %v2921_v49, %s2699_s1  ;;  %v2933_v52 = vpop.f32.mrb[22].mxu0 }
 0x104   :  { %3842 = vst [vmem:[#allocation3_spill] sm:$0xff] %v2933_v52  ;;  %v2935_v53 = vpop.f32.mrb[23].mxu0 }
 0x106   :  { %561 = vrot.lane.b32.xlu1 %v2929_v51, %s2699_s1 }
 0x107   :  { %567 = vrot.lane.b32.xlu0 %v2933_v52, %s2699_s1 }
 0x109   :  { %v2941_v54 = vpop.f32.mrb[24].mxu0 }
 0x10a   :  { %605 = vrot.lane.b32.xlu1 %v2941_v54, %s2699_s1  ;;  %v2945_v55 = vpop.f32.mrb[25].mxu0 }
 0x10b   :  { %563 = vrot.lane.b32.xlu0 %v2935_v53, %s2699_s1  ;;  %v2949_v56 = vpop.f32.mrb[26].mxu0 }
 0x10c   :  { %v2951_v57 = vpop.f32.mrb[27].mxu0 }
 0x10e   :  { %601 = vrot.lane.b32.xlu1 %v2945_v55, %s2699_s1 }
 0x10f   :  { %607 = vrot.lane.b32.xlu0 %v2949_v56, %s2699_s1 }
 0x111   :  { %v2957_v58 = vpop.f32.mrb[28].mxu0 }
 0x112   :  { %613 = vrot.lane.b32.xlu1 %v2957_v58, %s2699_s1  ;;  %v2961_v59 = vpop.f32.mrb[29].mxu0 }
 0x113   :  { %603 = vrot.lane.b32.xlu0 %v2951_v57, %s2699_s1  ;;  %v2965_v60 = vpop.f32.mrb[30].mxu0 }
 0x114   :  { %3843 = vst [vmem:[#allocation4_spill] sm:$0xff] %v2965_v60  ;;  %v2967_v61 = vpop.f32.mrb[31].mxu0 }
 0x115   :  { %3844 = vst [vmem:[#allocation5_spill] sm:$0xff] %v2967_v61 }
 0x116   :  { %609 = vrot.lane.b32.xlu1 %v2961_v59, %s2699_s1 }
 0x117   :  { %615 = vrot.lane.b32.xlu0 %v2965_v60, %s2699_s1 }
 0x119   :  { %v2973_v62 = vpop.f32.mrb[32].mxu0 }
 0x11a   :  { %653 = vrot.lane.b32.xlu1 %v2973_v62, %s2699_s1  ;;  %v2977_v63 = vpop.f32.mrb[33].mxu0 }
 0x11b   :  { %611 = vrot.lane.b32.xlu0 %v2967_v61, %s2699_s1  ;;  %v2981_v0 = vpop.f32.mrb[34].mxu0 }
 0x11c   :  { %v2983_v1 = vpop.f32.mrb[35].mxu0 }
 0x11e   :  { %649 = vrot.lane.b32.xlu1 %v2977_v63, %s2699_s1 }
 0x11f   :  { %655 = vrot.lane.b32.xlu0 %v2981_v0, %s2699_s1 }
 0x121   :  { %v2989_v2 = vpop.f32.mrb[36].mxu0 }
 0x122   :  { %661 = vrot.lane.b32.xlu1 %v2989_v2, %s2699_s1  ;;  %v2993_v3 = vpop.f32.mrb[37].mxu0 }
 0x123   :  { %651 = vrot.lane.b32.xlu0 %v2983_v1, %s2699_s1  ;;  %v2997_v4 = vpop.f32.mrb[38].mxu0 }
 0x124   :  { %3845 = vst [vmem:[#allocation6_spill] sm:$0xff] %v2997_v4  ;;  %v2999_v5 = vpop.f32.mrb[39].mxu0 }
 0x125   :  { %3846 = vst [vmem:[#allocation7_spill] sm:$0xff] %v2999_v5 }
 0x126   :  { %657 = vrot.lane.b32.xlu1 %v2993_v3, %s2699_s1 }
 0x127   :  { %663 = vrot.lane.b32.xlu0 %v2997_v4, %s2699_s1 }
 0x129   :  { %v2426_v6 = vpop.f32.mrb[40].mxu0 }
 0x12a   :  { %701 = vrot.lane.b32.xlu1 %v2426_v6, %s2699_s1  ;;  %v473_v7 = vpop.f32.mrb[41].mxu0 }
 0x12b   :  { %659 = vrot.lane.b32.xlu0 %v2999_v5, %s2699_s1  ;;  %v2427_v8 = vpop.f32.mrb[42].mxu0 }
 0x12c   :  { %v476_v9 = vpop.f32.mrb[43].mxu0 }
 0x12e   :  { %697 = vrot.lane.b32.xlu1 %v473_v7, %s2699_s1 }
 0x12f   :  { %703 = vrot.lane.b32.xlu0 %v2427_v8, %s2699_s1 }
 0x131   :  { %v3010_v10 = vpop.f32.mrb[44].mxu0 }
 0x132   :  { %3847 = vst [vmem:[#allocation8_spill] sm:$0xff] %v3010_v10  ;;  %789 = vrot.lane.b32.xlu1 %v2945_v55, %s2700_s3  ;;  %v489_v11 = vpop.f32.mrb[45].mxu0 }
 0x133   :  { %699 = vrot.lane.b32.xlu0 %v476_v9, %s2699_s1  ;;  %v3015_v12 = vpop.f32.mrb[46].mxu0 }
 0x134   :  { %3848 = vst [vmem:[#allocation9_spill] sm:$0xff] %v3015_v12  ;;  %v3017_v13 = vpop.f32.mrb[47].mxu0 }
 0x136   :  { %759 = vrot.lane.b32.xlu1 %v2921_v49, %s2700_s3 }
 0x137   :  { %757 = vrot.lane.b32.xlu0 %v2913_v47, %s2700_s3 }
 0x13a   :  { %709 = vrot.lane.b32.xlu1 %v3010_v10, %s2699_s1 }
 0x13b   :  { %829 = vrot.lane.b32.xlu0 %v2977_v63, %s2700_s3 }
 0x13e   :  { %705 = vrot.lane.b32.xlu1 %v489_v11, %s2699_s1 }
 0x13f   :  { %791 = vrot.lane.b32.xlu0 %v2951_v57, %s2700_s3 }
 0x142   :  { %869 = vrot.lane.b32.xlu1 %v473_v7, %s2700_s3  ;;  %v2434_v7 = vpack.c.bf16 %v992_v25, %v990_v23 }
 0x143   :  { %707 = vrot.lane.b32.xlu0 %v3017_v13, %s2699_s1 }
 0x144   :  { %2435 = vmatpush1.bf16.msra.mxu1 %v2434_v7 }
 0x146   :  { %711 = vrot.lane.b32.xlu1 %v3015_v12, %s2699_s1 }
 0x147   :  { %831 = vrot.lane.b32.xlu0 %v2983_v1, %s2700_s3 }
 0x14a   :  { %761 = vrot.lane.b32.xlu1 %v2911_v46, %s2700_s3 }
 0x14b   :  { %793 = vrot.lane.b32.xlu0 %v2941_v54, %s2700_s3 }
 0x14e   :  { %871 = vrot.lane.b32.xlu1 %v476_v9, %s2700_s3  ;;  %v994_v9 = vld [vmem:[%s3816_s4 + $0x20] sm:$0xff] }
 0x14f   :  { %914 = vrot.lane.b32.xlu0 %v912_v15, %s2701_s11  ;;  %v996_v15 = vld [vmem:[%s3816_s4 + $0x30] sm:$0xff] }
 0x150   :  { %v2438_v22 = vpack.c.bf16 %v996_v15, %v994_v9 }
 0x152   :  { %833 = vrot.lane.b32.xlu1 %v2973_v62, %s2700_s3 }
 0x153   :  { %795 = vrot.lane.b32.xlu0 %v2949_v56, %s2700_s3 }
 0x156   :  { %763 = vrot.lane.b32.xlu1 %v2917_v48, %s2700_s3 }
 0x157   :  { %835 = vrot.lane.b32.xlu0 %v2981_v0, %s2700_s3 }
 0x15a   :  { %873 = vrot.lane.b32.xlu1 %v2426_v6, %s2700_s3 }
 0x15b   :  { %765 = vrot.lane.b32.xlu0 %v2929_v51, %s2700_s3 }
 0x15c   :  { %v3059_v16 = vpop.permute.xlu0 %517 }
 0x15e   :  { %v3061_v17 = vpop.permute.xlu1 %519  ;;  %797 = vrot.lane.b32.xlu1 %v2961_v59, %s2700_s3 }
 0x15f   :  { %875 = vrot.lane.b32.xlu0 %v2427_v8, %s2700_s3  ;;  %v2436_v8 = vpack.c.bf16 %v997_v28, %v995_v26 }
 0x160   :  { %v514_v18 = vpop.permute.xlu0 %513 }
 0x161   :  { %2437 = vmatprep.subr.bf16.mxu1 %v2436_v8  ;;  %v3108_v25 = vadd.f32 %v514_v18, %v2865_v31 }
 0x162   :  { %v516_v19 = vpop.permute.xlu1 %515  ;;  %837 = vrot.lane.b32.xlu1 %v2993_v3, %s2700_s3  ;;  %2439 = vmatpush1.bf16.msra.mxu1 %v2438_v22 }
 0x163   :  { %799 = vrot.lane.b32.xlu0 %v2967_v61, %s2700_s3 }
 0x164   :  { %v3070_v20 = vpop.permute.xlu0 %525 }
 0x166   :  { %v3090_v6 = vpop.permute.xlu1 %527  ;;  %767 = vrot.lane.b32.xlu1 %v2935_v53, %s2700_s3 }
 0x167   :  { %839 = vrot.lane.b32.xlu0 %v2999_v5, %s2700_s3 }
 0x168   :  { %v3102_v21 = vpop.permute.xlu0 %521 }
 0x16a   :  { %v3104_v14 = vpop.permute.xlu1 %523  ;;  %877 = vrot.lane.b32.xlu1 %v489_v11, %s2700_s3  ;;  %v3120_v11 = vadd.f32 %v516_v19, %v2869_v33 }
 0x16c   :  { %3850 = vst [vmem:[#allocation11_spill] sm:$0xff] %v3120_v11 }
 0x16d   :  { %v554_v23 = vpop.permute.xlu0 %553 }
 0x16e   :  { %v3111_v26 = vadd.f32 %v554_v23, %v2883_v39  ;;  %801 = vrot.lane.b32.xlu1 %v2957_v58, %s2700_s3  ;;  %v558_v28 = vpop.permute.xlu1 %557 }
 0x170   :  { %v585_v24 = vmax.f32 %v3108_v25, %v3111_v26 }
 0x171   :  { %v560_v7 = vpop.permute.xlu0 %559 }
 0x174   :  { %v3117_v8 = vpop.permute.xlu1 %565 }
 0x175   :  { %v556_v9 = vpop.permute.xlu0 %555 }
 0x176   :  { %v3123_v31 = vadd.f32 %v556_v9, %v2889_v41 }
 0x178   :  { %3851 = vst [vmem:[#allocation12_spill] sm:$0xff] %v3123_v31  ;;  %v586_v39 = vmax.f32 %v3120_v11, %v3123_v31  ;;  %v3127_v18 = vpop.permute.xlu1 %561 }
 0x179   :  { %v3129_v15 = vpop.permute.xlu0 %567 }
 0x17c   :  { %v606_v22 = vpop.permute.xlu1 %605 }
 0x17d   :  { %v3131_v23 = vpop.permute.xlu0 %563 }
 0x180   :  { %v602_v27 = vpop.permute.xlu1 %601 }
 0x181   :  { %v3134_v12 = vadd.f32 %v602_v27, %v2913_v47  ;;  %v608_v10 = vpop.permute.xlu0 %607 }
 0x183   :  { %v633_v33 = vmax.f32 %v585_v24, %v3134_v12 }
 0x184   :  { %v3137_v19 = vpop.permute.xlu1 %613 }
 0x185   :  { %v604_v41 = vpop.permute.xlu0 %603 }
 0x186   :  { %v3140_v9 = vadd.f32 %v604_v41, %v2921_v49  ;;  %v3158_v49 = vadd.f32 %v2879_v38, %v558_v28  ;;  %v1001_v38 = vld [vmem:[%s3816_s4 + $0x58] sm:$0xff] }
 0x188   :  { %3852 = vst [vmem:[#allocation13_spill] sm:$0xff] %v3140_v9  ;;  %v3143_v4 = vmax.f32 %v586_v39, %v3140_v9  ;;  %v3145_v5 = vpop.permute.xlu1 %609  ;;  %3854 = vst [vmem:[#allocation15_spill] sm:$0xff] %v3158_v49  ;;  %v3165_v9 = vadd.f32 %v2863_v30, %v3059_v16  ;;  %v998_v30 = vld [vmem:[%s3816_s4 + $0x40] sm:$0xff] }
 0x189   :  { %v3147_v60 = vpop.permute.xlu0 %615 }
 0x18a   :  { %3853 = vst [vmem:[#allocation14_spill] sm:$0xff] %v3147_v60  ;;  %v3168_v60 = vadd.f32 %v2911_v46, %v606_v22  ;;  %v1000_v46 = vld [vmem:[%s3816_s4 + $0x50] sm:$0xff]  ;;  %v587_v16 = vmax.f32 %v3165_v9, %v3158_v49 }
 0x18c   :  { %v654_v52 = vpop.permute.xlu1 %653 }
 0x18d   :  { %v3149_v31 = vpop.permute.xlu0 %611  ;;  %v3189_v22 = vadd.f32 %v2941_v54, %v654_v52 }
 0x190   :  { %v650_v27 = vpop.permute.xlu1 %649 }
 0x191   :  { %v3152_v47 = vadd.f32 %v650_v27, %v2945_v55  ;;  %v656_v24 = vpop.permute.xlu0 %655  ;;  %v999_v55 = vld [vmem:[%s3816_s4 + $0x48] sm:$0xff] }
 0x193   :  { %v681_v11 = vmax.f32 %v633_v33, %v3152_v47  ;;  %v2440_v33 = vpack.c.bf16 %v1001_v38, %v999_v55  ;;  %v635_v55 = vmax.f32 %v587_v16, %v3168_v60  ;;  %v3199_v38 = vadd.f32 %v2867_v32, %v3061_v17 }
 0x194   :  { %v3155_v61 = vpop.permute.xlu1 %661  ;;  %v3213_v32 = vadd.f32 %v2949_v56, %v656_v24  ;;  %v1153_v56 = vld [vmem:[%s3817_s6 + $0x8] sm:$0xff]  ;;  %v1155_v24 = vld [vmem:[%s3817_s6 + $0x18] sm:$0xff] }
 0x195   :  { %v652_v39 = vpop.permute.xlu0 %651  ;;  %2441 = vmatprep.subr.bf16.mxu1 %v2440_v33  ;;  %v683_v52 = vmax.f32 %v635_v55, %v3189_v22 }
 0x196   :  { %v3161_v41 = vadd.f32 %v652_v39, %v2951_v57  ;;  %v3194_v39 = vadd.f32 %v2885_v40, %v560_v7  ;;  %v2702_v40 = vmov 0.0  }
 0x197   :  { %1103 = vmatprep.mubr.f32.mxu1 %v2702_v40  ;;  %1781 = vmatprep.mubr.f32.mxu0 %v2702_v40 }
 0x198   :  { %3855 = vst [vmem:[#allocation16_spill] sm:$0xff] %v3161_v41  ;;  %v682_v28 = vmax.f32 %v3143_v4, %v3161_v41  ;;  %v3178_v57 = vpop.permute.xlu1 %657  ;;  %v2442_v4 = vpack.c.bf16 %v1000_v46, %v998_v30  ;;  %v3202_v41 = vadd.f32 %v2917_v48, %v608_v10  ;;  %v588_v7 = vmax.f32 %v3199_v38, %v3194_v39 }
 0x199   :  { %v3191_v27 = vpop.permute.xlu0 %663 }
 0x19a   :  { %2443 = vmatpush1.bf16.msra.mxu1 %v2442_v4  ;;  %v636_v10 = vmax.f32 %v588_v7, %v3202_v41  ;;  %v3229_v7 = vpack.c.bf16 %v1155_v24, %v1153_v56 }
 0x19c   :  { %v702_v49 = vpop.permute.xlu1 %701  ;;  %v684_v46 = vmax.f32 %v636_v10, %v3213_v32  ;;  %2445 = vmatprep.subr.bf16.mxu1 %v3229_v7  ;;  %2509 = vmatprep.subr.bf16.mxu0 %v3229_v7 }
 0x19d   :  { %v723_v54 = vadd.f32 %v2973_v62, %v702_v49  ;;  %v3206_v30 = vpop.permute.xlu0 %659 }
 0x19f   :  { %v731_v48 = vmax.f32 %v683_v52, %v723_v54 }
 0x1a0   :  { %v698_v17 = vpop.permute.xlu1 %697 }
 0x1a1   :  { %v721_v33 = vadd.f32 %v698_v17, %v2977_v63  ;;  %v704_v62 = vpop.permute.xlu0 %703  ;;  %v743_v49 = vadd.f32 %v2861_v29, %v731_v48  ;;  %v1152_v63 = vld [vmem:[%s3817_s6] sm:$0xff] }
 0x1a2   :  { %v724_v16 = vadd.f32 %v2981_v0, %v704_v62  ;;  %v1154_v0 = vld [vmem:[%s3817_s6 + $0x10] sm:$0xff] }
 0x1a3   :  { %v729_v4 = vmax.f32 %v681_v11, %v721_v33  ;;  %v751_v55 = vmax.f32 %v743_v49, 0.0  ;;  %v3236_v11 = vadd.f32 %v2895_v42, %v3117_v8  ;;  %v3240_v17 = vpack.c.bf16 %v1154_v0, %v1152_v63 }
 0x1a4   :  { %v732_v52 = vmax.f32 %v684_v46, %v724_v16  ;;  %v790_v54 = vpop.permute.xlu1 %789  ;;  %v3248_v42 = vadd.f32 %v2871_v34, %v3070_v20  ;;  %v3252_v8 = vadd.f32 %v2925_v50, %v3137_v19  ;;  %v3263_v34 = vadd.f32 %v2957_v58, %v3155_v61  ;;  %v1157_v61 = vld [vmem:[%s3817_s6 + $0x28] sm:$0xff] }
 0x1a5   :  { %v700_v48 = vpop.permute.xlu0 %699  ;;  %953 = vrot.lane.b32.xlu0 %v751_v55, %s2703_s19  ;;  %v741_v10 = vadd.f32 %v2861_v29, %v729_v4  ;;  %2511 = vmatpush1.bf16.msra.mxu0 %v3240_v17  ;;  %v3268_v19 = vadd.f32 %v3102_v21, %v2873_v35  ;;  %v3277_v58 = vadd.f32 %v3145_v5, %v2929_v51  ;;  %v1159_v35 = vld [vmem:[%s3817_s6 + $0x38] sm:$0xff]  ;;  %v1156_v21 = vld [vmem:[%s3817_s6 + $0x20] sm:$0xff]  ;;  %v1158_v5 = vld [vmem:[%s3817_s6 + $0x30] sm:$0xff] }
 0x1a6   :  { %v722_v33 = vadd.f32 %v700_v48, %v2983_v1  ;;  %v744_v62 = vadd.f32 %v2861_v29, %v732_v52  ;;  %v3257_v1 = vadd.f32 %v3127_v18, %v2899_v43  ;;  %v591_v55 = vmax.f32 %v3248_v42, %v3236_v11 }
 0x1a7   :  { %v749_v49 = vmax.f32 %v741_v10, 0.0  ;;  %v813_v43 = vadd.f32 %v790_v54, %v3111_v26  ;;  %v3290_v51 = vpack.c.bf16 %v1159_v35, %v1157_v61  ;;  %v3298_v54 = vadd.f32 %v3178_v57, %v2961_v59 }
 0x1a8   :  { %v730_v46 = vmax.f32 %v682_v28, %v722_v33  ;;  %v760_v16 = vpop.permute.xlu1 %759  ;;  %v752_v4 = vmax.f32 %v744_v62, 0.0  ;;  %v639_v56 = vmax.f32 %v591_v55, %v3252_v8  ;;  %v3303_v10 = vpack.c.bf16 %v1158_v5, %v1156_v21  ;;  %v3857_v55 = vld [vmem:[#allocation11_spill] sm:$0xff] }
 0x1a9   :  { %v758_v20 = vpop.permute.xlu0 %757  ;;  %949 = vrot.lane.b32.xlu0 %v749_v49, %s2703_s19  ;;  %v3307_v33 = vadd.f32 %v3131_v23, %v2905_v45  ;;  %2513 = vmatprep.subr.bf16.mxu0 %v3290_v51  ;;  %v3320_v49 = vadd.f32 %v2901_v44, %v3129_v15  ;;  %v3324_v45 = vadd.f32 %v3149_v31, %v2935_v53  ;;  %v3856_v31 = vld [vmem:[#allocation5_spill] sm:$0xff] }
 0x1aa   :  { %v781_v18 = vadd.f32 %v758_v20, %v3108_v25  ;;  %955 = vrot.lane.b32.xlu1 %v752_v4, %s2703_s19  ;;  %v742_v28 = vadd.f32 %v2861_v29, %v730_v46  ;;  %v589_v25 = vmax.f32 %v3268_v19, %v3257_v1  ;;  %v687_v52 = vmax.f32 %v639_v56, %v3263_v34 }
 0x1ab   :  { %2515 = vmatpush1.bf16.msra.mxu0 %v3303_v10  ;;  %v3330_v46 = vadd.f32 %v2875_v36, %v3090_v6  ;;  %v3341_v15 = vadd.f32 %v3206_v30, %v3856_v31  ;;  %v782_v36 = vadd.f32 %v760_v16, %v3857_v55  ;;  %v3858_v6 = vld [vmem:[#allocation12_spill] sm:$0xff]  ;;  %v1163_v30 = vld [vmem:[%s3817_s6 + $0x58] sm:$0xff]  ;;  %v1160_v16 = vld [vmem:[%s3817_s6 + $0x40] sm:$0xff] }
 0x1ac   :  { %v821_v26 = vmax.f32 %v781_v18, %v813_v43  ;;  %v710_v24 = vpop.permute.xlu1 %709  ;;  %v750_v63 = vmax.f32 %v742_v28, 0.0  ;;  %v637_v59 = vmax.f32 %v589_v25, %v3277_v58  ;;  %v3860_v43 = vld [vmem:[#allocation3_spill] sm:$0xff]  ;;  %v1162_v25 = vld [vmem:[%s3817_s6 + $0x50] sm:$0xff]  ;;  %v3864_v55 = vld [vmem:[#allocation13_spill] sm:$0xff] }
 0x1ad   :  { %v727_v0 = vadd.f32 %v2989_v2, %v710_v24  ;;  %v830_v48 = vpop.permute.xlu0 %829  ;;  %769 = vrot.lane.b32.xlu0 %v2925_v50, %s2700_s3  ;;  %v3316_v50 = vadd.f32 %v3104_v14, %v2877_v37  ;;  %v1161_v28 = vld [vmem:[%s3817_s6 + $0x48] sm:$0xff] }
 0x1ae   :  { %v853_v62 = vadd.f32 %v830_v48, %v3134_v12  ;;  %951 = vrot.lane.b32.xlu1 %v750_v63, %s2703_s19  ;;  %v685_v4 = vmax.f32 %v637_v59, %v3298_v54  ;;  %v3363_v21 = vpack.c.bf16 %v1163_v30, %v1161_v28  ;;  %v1166_v30 = vld [vmem:[%s3817_s6 + $0x70] sm:$0xff] }
 0x1af   :  { %v735_v57 = vmax.f32 %v687_v52, %v727_v0  ;;  %v590_v53 = vmax.f32 %v3316_v50, %v3307_v33  ;;  %v3378_v0 = vpack.c.bf16 %v1162_v25, %v1160_v16 }
 0x1b0   :  { %v3326_v12 = vmax.f32 %v821_v26, %v853_v62  ;;  %v706_v23 = vpop.permute.xlu1 %705  ;;  %v3861_v26 = vld [vmem:[#allocation4_spill] sm:$0xff]  ;;  %v3862_v62 = vld [vmem:[#allocation7_spill] sm:$0xff]  ;;  %2517 = vmatprep.subr.bf16.mxu0 %v3363_v21 }
 0x1b1   :  { %v725_v37 = vadd.f32 %v706_v23, %v2993_v3  ;;  %v792_v14 = vpop.permute.xlu0 %791  ;;  %879 = vrot.lane.b32.xlu0 %v3017_v13, %s2700_s3  ;;  %v747_v44 = vadd.f32 %v2861_v29, %v735_v57  ;;  %v3859_v3 = vld [vmem:[#allocation14_spill] sm:$0xff]  ;;  %v638_v56 = vmax.f32 %v590_v53, %v3324_v45  ;;  %v3370_v24 = vadd.f32 %v3861_v26, %v3191_v27 }
 0x1b2   :  { %v814_v20 = vadd.f32 %v792_v14, %v3858_v6  ;;  %841 = vrot.lane.b32.xlu1 %v2989_v2, %s2700_s3  ;;  %v3349_v18 = vadd.f32 %v3860_v43, %v3859_v3  ;;  %v592_v2 = vmax.f32 %v3330_v46, %v3320_v49  ;;  %2519 = vmatpush1.bf16.msra.mxu0 %v3378_v0  ;;  %v3863_v14 = vld [vmem:[#allocation6_spill] sm:$0xff]  ;;  %v3865_v6 = vld [vmem:[#allocation8_spill] sm:$0xff]  ;;  %v1167_v3 = vld [vmem:[%s3817_s6 + $0x78] sm:$0xff] }
 0x1b3   :  { %v733_v13 = vmax.f32 %v685_v4, %v725_v37  ;;  %v686_v48 = vmax.f32 %v638_v56, %v3341_v15 }
 0x1b4   :  { %v822_v61 = vmax.f32 %v782_v36, %v814_v20  ;;  %v870_v35 = vpop.permute.xlu1 %869 }
 0x1b5   :  { %v3373_v63 = vadd.f32 %v870_v35, %v3152_v47  ;;  %803 = vrot.lane.b32.xlu0 %v3861_v26, %s2700_s3  ;;  %v708_v5 = vpop.permute.xlu0 %707  ;;  %v745_v52 = vadd.f32 %v2861_v29, %v733_v13  ;;  %v640_v47 = vmax.f32 %v592_v2, %v3349_v18 }
 0x1b6   :  { %v726_v59 = vadd.f32 %v708_v5, %v3862_v62  ;;  %771 = vrot.lane.b32.xlu1 %v3860_v43, %s2700_s3  ;;  %v1164_v43 = vld [vmem:[%s3817_s6 + $0x60] sm:$0xff] }
 0x1b7   :  { %v901_v27 = vmax.f32 %v3326_v12, %v3373_v63  ;;  %v753_v57 = vmax.f32 %v745_v52, 0.0  ;;  %v688_v37 = vmax.f32 %v640_v47, %v3370_v24  ;;  %v1165_v12 = vld [vmem:[%s3817_s6 + $0x68] sm:$0xff]  ;;  %v3410_v35 = vpack.c.bf16 %v1166_v30, %v1164_v43  ;;  %v3867_v52 = vld [vmem:[#allocation9_spill] sm:$0xff] }
 0x1b8   :  { %v734_v23 = vmax.f32 %v686_v48, %v726_v59  ;;  %v712_v4 = vpop.permute.xlu1 %711  ;;  %v3405_v28 = vpack.c.bf16 %v1167_v3, %v1165_v12  ;;  %v755_v63 = vmax.f32 %v747_v44, 0.0  ;;  %v3868_v3 = vld [vmem:[#allocation15_spill] sm:$0xff] }
 0x1b9   :  { %v728_v53 = vadd.f32 %v3863_v14, %v712_v4  ;;  %957 = vrot.lane.b32.xlu0 %v753_v57, %s2703_s19  ;;  %v832_v31 = vpop.permute.xlu0 %831 }
 0x1ba   :  { %v854_v36 = vadd.f32 %v832_v31, %v3864_v55  ;;  %881 = vrot.lane.b32.xlu1 %v3865_v6, %s2700_s3  ;;  %v746_v20 = vadd.f32 %v2861_v29, %v734_v23  ;;  %2521 = vmatprep.subr.bf16.mxu0 %v3405_v28 }
 0x1bb   :  { %v736_v13 = vmax.f32 %v688_v37, %v728_v53  ;;  %2523 = vmatpush1.bf16.msra.mxu0 %v3410_v35 }
 0x1bc   :  { %v862_v16 = vmax.f32 %v822_v61, %v854_v36  ;;  %v762_v2 = vpop.permute.xlu1 %761  ;;  %v754_v56 = vmax.f32 %v746_v20, 0.0  ;;  %2541 = vmatprep.subr.bf16.mxu0 %v3229_v7  ;;  %v3866_v61 = vld [vmem:[#allocation16_spill] sm:$0xff] }
 0x1bd   :  { %843 = vrot.lane.b32.xlu0 %v3863_v14, %s2700_s3  ;;  %v748_v25 = vadd.f32 %v2861_v29, %v736_v13  ;;  %v794_v29 = vpop.permute.xlu0 %793  ;;  %v783_v12 = vadd.f32 %v762_v2, %v3165_v9  ;;  %v933_v9 = vld [vmem:[%s3818_s0] sm:$0xff] }
 0x1be   :  { %959 = vrot.lane.b32.xlu1 %v754_v56, %s2703_s19  ;;  %v815_v43 = vadd.f32 %v794_v29, %v3868_v3 }
 0x1bf   :  { %v756_v62 = vmax.f32 %v748_v25, 0.0 }
 0x1c0   :  { %v872_v26 = vpop.permute.xlu1 %871  ;;  %v823_v25 = vmax.f32 %v783_v12, %v815_v43 }
 0x1c1   :  { %v894_v5 = vadd.f32 %v872_v26, %v3866_v61  ;;  %883 = vrot.lane.b32.xlu0 %v3867_v52, %s2700_s3  ;;  %v3424_v47 = vpop.permute.xlu0 %914 }
 0x1c2   :  { %961 = vrot.lane.b32.xlu1 %v755_v63, %s2703_s19  ;;  %v917_v56 = vadd.f32 %v3424_v47, %v901_v27 }
 0x1c3   :  { %v902_v48 = vmax.f32 %v862_v16, %v894_v5 }
 0x1c4   :  { %v834_v59 = vpop.permute.xlu1 %833 }
 0x1c5   :  { %963 = vrot.lane.b32.xlu0 %v756_v62, %s2703_s19  ;;  %v796_v23 = vpop.permute.xlu0 %795  ;;  %v855_v13 = vadd.f32 %v834_v59, %v3168_v60  ;;  %v925_v62 = vmax.f32 %v917_v56, 0.0  ;;  %v918_v59 = vadd.f32 %v3424_v47, %v902_v48  ;;  %v936_v56 = vld [vmem:[%s3818_s0 + $0x18] sm:$0xff] }
 0x1c6   :  { %v816_v26 = vadd.f32 %v796_v23, %v3194_v39 }
 0x1c7   :  { %v863_v2 = vmax.f32 %v823_v25, %v855_v13 }
 0x1c8   :  { %v764_v57 = vpop.permute.xlu1 %763 }
 0x1c9   :  { %v836_v37 = vpop.permute.xlu0 %835  ;;  %v784_v30 = vadd.f32 %v764_v57, %v3199_v38 }
 0x1ca   :  { %v856_v60 = vadd.f32 %v836_v37, %v3202_v41 }
 0x1cb   :  { %v824_v5 = vmax.f32 %v784_v30, %v816_v26 }
 0x1cc   :  { %v874_v4 = vpop.permute.xlu1 %873 }
 0x1cd   :  { %v766_v14 = vpop.permute.xlu0 %765  ;;  %v895_v63 = vadd.f32 %v874_v4, %v3189_v22  ;;  %v864_v4 = vmax.f32 %v824_v5, %v856_v60 }
 0x1ce   :  { %v785_v57 = vadd.f32 %v766_v14, %v3268_v19 }
 0x1cf   :  { %v903_v27 = vmax.f32 %v863_v2, %v895_v63 }
 0x1d0   :  { %v798_v44 = vpop.permute.xlu1 %797 }
 0x1d1   :  { %v876_v31 = vpop.permute.xlu0 %875  ;;  %v817_v38 = vadd.f32 %v798_v44, %v3257_v1  ;;  %v919_v19 = vadd.f32 %v3424_v47, %v903_v27 }
 0x1d2   :  { %v896_v39 = vadd.f32 %v876_v31, %v3213_v32  ;;  %v934_v32 = vld [vmem:[%s3818_s0 + $0x8] sm:$0xff] }
 0x1d3   :  { %v825_v37 = vmax.f32 %v785_v57, %v817_v38 }
 0x1d4   :  { %v838_v53 = vpop.permute.xlu1 %837 }
 0x1d5   :  { %v800_v36 = vpop.permute.xlu0 %799  ;;  %v857_v23 = vadd.f32 %v838_v53, %v3277_v58  ;;  %v904_v58 = vmax.f32 %v864_v4, %v896_v39  ;;  %v926_v53 = vmax.f32 %v918_v59, 0.0  ;;  %v938_v4 = vld [vmem:[%s3818_s0 + $0x28] sm:$0xff] }
 0x1d6   :  { %v818_v48 = vadd.f32 %v800_v36, %v3307_v33  ;;  %v927_v36 = vmax.f32 %v919_v19, 0.0 }
 0x1d7   :  { %v920_v30 = vadd.f32 %v3424_v47, %v904_v58  ;;  %v939_v58 = vld [vmem:[%s3818_s0 + $0x30] sm:$0xff] }
 0x1d8   :  { %v768_v55 = vpop.permute.xlu1 %767 }
 0x1d9   :  { %v840_v20 = vpop.permute.xlu0 %839  ;;  %v786_v1 = vadd.f32 %v768_v55, %v3316_v50  ;;  %v935_v50 = vld [vmem:[%s3818_s0 + $0x10] sm:$0xff]  ;;  %v865_v55 = vmax.f32 %v825_v37, %v857_v23 }
 0x1da   :  { %v858_v12 = vadd.f32 %v840_v20, %v3324_v45 }
 0x1dc   :  { %v878_v6 = vpop.permute.xlu1 %877 }
 0x1dd   :  { %v897_v44 = vadd.f32 %v878_v6, %v3298_v54  ;;  %v826_v6 = vmax.f32 %v786_v1, %v818_v48 }
 0x1df   :  { %v905_v43 = vmax.f32 %v865_v55, %v897_v44  ;;  %v866_v45 = vmax.f32 %v826_v6, %v858_v12 }
 0x1e0   :  { %v3433_v61 = vpop.permute.xlu1 %801 }
 0x1e1   :  { %v819_v38 = vadd.f32 %v3433_v61, %v3236_v11 }
 0x217   :  { %v954_v16 = vpop.permute.xlu0 %953 }
 0x218   :  { %v975_v13 = vsel %vm206_vm0, %v935_v50, %v954_v16  ;;  %v921_v16 = vadd.f32 %v3424_v47, %v905_v43  ;;  %v940_v43 = vld [vmem:[%s3818_s0 + $0x38] sm:$0xff] }
 0x219   :  { %v984_v20 = vsel %vm981_vm1, %v975_v13, %v927_v36  ;;  %v3869_v36 = vld [vmem:[#allocation2_spill] sm:$0xff] }
 0x21a   :  { %v929_v27 = vmax.f32 %v921_v16, 0.0 }
 0x21b   :  { %v950_v52 = vpop.permute.xlu0 %949 }
 0x21c   :  { %v973_v22 = vsel %vm206_vm0, %v933_v9, %v950_v52  ;;  %v956_v29 = vpop.permute.xlu1 %955 }
 0x21d   :  { %v982_v41 = vsel %vm981_vm1, %v973_v22, %v925_v62  ;;  %v976_v63 = vsel %vm206_vm0, %v936_v56, %v956_v29  ;;  %v937_v62 = vld [vmem:[%s3818_s0 + $0x20] sm:$0xff] }
 0x21e   :  { %2326 = vmatmul.mubr.msk.f32.vlgmr.msra.gmra.mrb[0].mxu1 %vm1014_vm2, %v982_v41  ;;  %v3870_v56 = vld [vmem:[#allocation10_spill] sm:$0xff] }
 0x21f   :  { %v770_v31 = vpop.permute.xlu0 %769  ;;  %2447 = vmatpush1.bf16.msra.mxu1 %v3240_v17  ;;  %1109 = vmatprep.mubr.f32.mxu1 %v2702_v40 }
 0x220   :  { %v952_v14 = vpop.permute.xlu1 %951  ;;  %2449 = vmatprep.subr.bf16.mxu1 %v3290_v51  ;;  %v787_v9 = vadd.f32 %v770_v31, %v3248_v42 }
 0x221   :  { %v974_v54 = vsel %vm206_vm0, %v934_v32, %v952_v14 }
 0x222   :  { %v983_v3 = vsel %vm981_vm1, %v974_v54, %v926_v53  ;;  %v827_v39 = vmax.f32 %v787_v9, %v819_v38 }
 0x223   :  { %v880_v33 = vpop.permute.xlu0 %879  ;;  %2327 = vmatmul.mubr.msk.f32.gmra.mrb[2].mxu1 %vm1014_vm2, %v983_v3 }
 0x224   :  { %v898_v25 = vadd.f32 %v880_v33, %v3341_v15  ;;  %v842_v26 = vpop.permute.xlu1 %841  ;;  %1115 = vmatprep.mubr.f32.mxu1 %v2702_v40  ;;  %2451 = vmatpush1.bf16.msra.mxu1 %v3303_v10  ;;  %v928_v15 = vmax.f32 %v920_v30, 0.0 }
 0x225   :  { %2453 = vmatprep.subr.bf16.mxu1 %v3363_v21  ;;  %v859_v52 = vadd.f32 %v842_v26, %v3252_v8 }
 0x226   :  { %v906_v5 = vmax.f32 %v866_v45, %v898_v25  ;;  %v985_v42 = vsel %vm981_vm1, %v976_v63, %v928_v15 }
 0x227   :  { %v804_v2 = vpop.permute.xlu0 %803  ;;  %2328 = vmatmul.mubr.msk.f32.gmra.mrb[4].mxu1 %vm1014_vm2, %v984_v20  ;;  %v867_v8 = vmax.f32 %v827_v39, %v859_v52 }
 0x228   :  { %v772_v60 = vpop.permute.xlu1 %771  ;;  %1121 = vmatprep.mubr.f32.mxu1 %v2702_v40  ;;  %2455 = vmatpush1.bf16.msra.mxu1 %v3378_v0  ;;  %v922_v29 = vadd.f32 %v3424_v47, %v906_v5  ;;  %v820_v23 = vadd.f32 %v804_v2, %v3320_v49 }
 0x229   :  { %2457 = vmatprep.subr.bf16.mxu1 %v3405_v28  ;;  %v788_v41 = vadd.f32 %v772_v60, %v3330_v46 }
 0x22a   :  { %v930_v37 = vmax.f32 %v922_v29, 0.0 }
 0x22b   :  { %v958_v22 = vpop.permute.xlu0 %957  ;;  %2329 = vmatmul.mubr.msk.f32.gmra.mrb[6].mxu1 %vm1014_vm2, %v985_v42  ;;  %v828_v19 = vmax.f32 %v788_v41, %v820_v23 }
 0x22c   :  { %v977_v59 = vsel %vm206_vm0, %v937_v62, %v958_v22  ;;  %v882_v11 = vpop.permute.xlu1 %881  ;;  %1127 = vmatprep.mubr.f32.mxu1 %v2702_v40  ;;  %2459 = vmatpush1.bf16.msra.mxu1 %v3410_v35 }
 0x22d   :  { %v899_v61 = vadd.f32 %v882_v11, %v3263_v34  ;;  %v986_v57 = vsel %vm981_vm1, %v977_v59, %v929_v27  ;;  %2461 = vmatprep.subr.bf16.mxu1 %v3229_v7 }
 0x22f   :  { %v907_v1 = vmax.f32 %v867_v8, %v899_v61  ;;  %v844_v32 = vpop.permute.xlu0 %843  ;;  %2330 = vmatmul.mubr.msk.f32.gmra.mrb[8].mxu1 %vm1014_vm2, %v986_v57 }
 0x230   :  { %v860_v44 = vadd.f32 %v844_v32, %v3349_v18  ;;  %v960_v34 = vpop.permute.xlu1 %959  ;;  %1133 = vmatprep.mubr.f32.mxu1 %v2702_v40 }
 0x231   :  { %v923_v31 = vadd.f32 %v3424_v47, %v907_v1  ;;  %v978_v49 = vsel %vm206_vm0, %v938_v4, %v960_v34 }
 0x232   :  { %v987_v46 = vsel %vm981_vm1, %v978_v49, %v930_v37  ;;  %v868_v14 = vmax.f32 %v828_v19, %v860_v44  ;;  %v1168_v37 = vld [vmem:[%s3820_s7] sm:$0x3] }
 0x233   :  { %v931_v48 = vmax.f32 %v923_v31, 0.0  ;;  %v884_v50 = vpop.permute.xlu0 %883  ;;  %2331 = vmatmul.mubr.msk.f32.gmra.mrb[10].mxu1 %vm1014_vm2, %v987_v46  ;;  %v3572_v34 = vrot.slane %v1168_v37, %v3869_v36  ;;  %v3577_v19 = vrot.slane %v1168_v37, %v3870_v56 }
 0x234   :  { %v900_v18 = vadd.f32 %v884_v50, %v3370_v24  ;;  %v962_v53 = vpop.permute.xlu1 %961  ;;  %1139 = vmatprep.mubr.f32.mxu1 %v2702_v40 }
 0x235   :  { %v979_v55 = vsel %vm206_vm0, %v939_v58, %v962_v53 }
 0x236   :  { %v908_v54 = vmax.f32 %v868_v14, %v900_v18  ;;  %v988_v6 = vsel %vm981_vm1, %v979_v55, %v931_v48 }
 0x237   :  { %2332 = vmatmul.mubr.msk.f32.gmra.mrb[12].mxu1 %vm1014_vm2, %v988_v6  ;;  %v964_v3 = vpop.permute.xlu0 %963 }
 0x238   :  { %v924_v12 = vadd.f32 %v3424_v47, %v908_v54  ;;  %1145 = vmatprep.mubr.f32.mxu1 %v2702_v40  ;;  %v980_v13 = vsel %vm206_vm0, %v940_v43, %v964_v3  ;;  %v1002_v47 = vld [vmem:[%s3819_s5] sm:$0x3] }
 0x239   :  { %v1007_v30 = vrot.slane %v1002_v47, %v3869_v36  ;;  %v1011_v25 = vrot.slane %v1002_v47, %v3870_v56 }
 0x23a   :  { %v932_v24 = vmax.f32 %v924_v12, 0.0 }
 0x23c   :  { %v989_v33 = vsel %vm981_vm1, %v980_v13, %v932_v24 }
 0x23d   :  { %2333 = vmatmul.mubr.msk.f32.gmra.mrb[14].mxu1 %vm1014_vm2, %v989_v33 }
 0x23e   :  { %1248 = vmatprep.mubr.f32.mxu1 %v2702_v40 }
 0x241   :  { %1249 = vmatmul.mubr.f32.vlgmr.msra.gmra.mrb[16].mxu1 %v2702_v40 }
 0x242   :  { %2463 = vmatpush1.bf16.msra.mxu1 %v3240_v17  ;;  %1379 = vmatprep.mubr.f32.mxu1 %v2702_v40 }
 0x243   :  { %2465 = vmatprep.subr.bf16.mxu1 %v3290_v51 }
 0x246   :  { %2467 = vmatpush1.bf16.msra.mxu1 %v3303_v10 }
 0x247   :  { %2469 = vmatprep.subr.bf16.mxu1 %v3363_v21 }
 0x24a   :  { %2471 = vmatpush1.bf16.msra.mxu1 %v3378_v0 }
 0x24b   :  { %2473 = vmatprep.subr.bf16.mxu1 %v3405_v28 }
 0x24e   :  { %2475 = vmatpush1.bf16.msra.mxu1 %v3410_v35 }
 0x24f   :  { %2477 = vmatprep.subr.bf16.mxu1 %v3229_v7 }
 0x2f1   :  { %v1105_v26 = vpop.f32.mrb[0].mxu1 }
 0x2f2   :  { %v3540_v45 = vadd.f32 %v1105_v26, %v1007_v30  ;;  %v1107_v20 = vpop.f32.mrb[1].mxu1 }
 0x2f3   :  { %v3542_v16 = vadd.f32 %v1107_v20, %v1011_v25 }
 0x2f6   :  { %v1111_v63 = vpop.f32.mrb[2].mxu1 }
 0x2f7   :  { %v3544_v9 = vadd.f32 %v1111_v63, %v1007_v30  ;;  %v1113_v2 = vpop.f32.mrb[3].mxu1 }
 0x2f8   :  { %v3546_v15 = vadd.f32 %v1113_v2, %v1011_v25 }
 0x2fa   :  { %v1117_v5 = vpop.f32.mrb[4].mxu1 }
 0x2fb   :  { %v3548_v60 = vadd.f32 %v1117_v5, %v1007_v30  ;;  %v1119_v38 = vpop.f32.mrb[5].mxu1 }
 0x2fc   :  { %v3550_v52 = vadd.f32 %v1119_v38, %v1011_v25 }
 0x2fe   :  { %v1123_v62 = vpop.f32.mrb[6].mxu1 }
 0x2ff   :  { %v3552_v42 = vadd.f32 %v1123_v62, %v1007_v30  ;;  %v1125_v27 = vpop.f32.mrb[7].mxu1 }
 0x300   :  { %v3554_v39 = vadd.f32 %v1125_v27, %v1011_v25 }
 0x302   :  { %v1129_v22 = vpop.f32.mrb[8].mxu1 }
 0x303   :  { %v3556_v29 = vadd.f32 %v1129_v22, %v1007_v30  ;;  %v1131_v59 = vpop.f32.mrb[9].mxu1 }
 0x304   :  { %v3558_v11 = vadd.f32 %v1131_v59, %v1011_v25 }
 0x306   :  { %v1135_v8 = vpop.f32.mrb[10].mxu1 }
 0x307   :  { %v3560_v61 = vadd.f32 %v1135_v8, %v1007_v30  ;;  %v1137_v57 = vpop.f32.mrb[11].mxu1 }
 0x308   :  { %v3562_v23 = vadd.f32 %v1137_v57, %v1011_v25 }
 0x30a   :  { %v1141_v41 = vpop.f32.mrb[12].mxu1 }
 0x30b   :  { %v3564_v4 = vadd.f32 %v1141_v41, %v1007_v30  ;;  %v1143_v1 = vpop.f32.mrb[13].mxu1 }
 0x30c   :  { %v3566_v32 = vadd.f32 %v1143_v1, %v1011_v25 }
 0x310   :  { %v1147_v44 = vpop.f32.mrb[14].mxu1 }
 0x311   :  { %v3574_v31 = vadd.f32 %v1147_v44, %v1007_v30  ;;  %v1149_v49 = vpop.f32.mrb[15].mxu1 }
 0x312   :  { %v1150_v46 = vadd.f32 %v1149_v49, %v1011_v25 }
 0x314   :  { %v1250_v58 = vpop.f32.mrb[16].mxu1 }
 0x315   :  { %v1251_v48 = vadd.f32 %v1250_v58, %v3572_v34  ;;  %v1252_v50 = vpop.f32.mrb[17].mxu1 }
 0x316   :  { %v1253_v14 = vadd.f32 %v1252_v50, %v3577_v19 }
 0x317   :  { %1263 = vrot.lane.b32.xlu1 %v1251_v48, %s2704_s13  ;;  %v1255_v18 = vadd.f32 %v1251_v48, %v3540_v45 }
 0x318   :  { %1289 = vrot.lane.b32.xlu0 %v1253_v14, %s2704_s13  ;;  %v1281_v53 = vadd.f32 %v1253_v14, %v1150_v46 }
 0x319   :  { %v2334_v55 = vmul.f32 -1.442695, %v1255_v18 }
 0x31a   :  { %v2335_v54 = vmul.f32 -1.442695, %v1281_v53 }
 0x31b   :  { %2603 = vpow2.f32 %v2334_v55 }
 0x31c   :  { %2605 = vpow2.f32 %v2335_v54 }
 0x325   :  { %v2604_v6 = vpop.eup %2603 }
 0x326   :  { %v2606_v12 = vpop.eup %2605  ;;  %v1259_v3 = vadd.f32 1.0, %v2604_v6 }
 0x327   :  { %v1285_v43 = vadd.f32 1.0, %v2606_v12 }
 0x328   :  { %2607 = vrcp.f32 %v1259_v3 }
 0x329   :  { %2609 = vrcp.f32 %v1285_v43 }
 0x332   :  { %v2608_v24 = vpop.eup %2607 }
 0x333   :  { %v2610_v33 = vpop.eup %2609  ;;  %v1273_v5 = vsub.f32 1.0, %v2608_v24  ;;  %v1279_v62 = vmul.f32 0.0, %v2608_v24 }
 0x334   :  { %v1299_v8 = vsub.f32 1.0, %v2610_v33  ;;  %v1305_v57 = vmul.f32 0.0, %v2610_v33 }
 0x389   :  { %v1264_v13 = vpop.permute.xlu1 %1263 }
 0x38a   :  { %v1266_v47 = vmul.f32 %v2608_v24, %v1264_v13  ;;  %v1290_v36 = vpop.permute.xlu0 %1289 }
 0x38b   :  { %v1292_v30 = vmul.f32 %v2610_v33, %v1290_v36 }
 0x38c   :  { %1268 = vrot.lane.b32.xlu1 %v1266_v47, %s2704_s13 }
 0x38d   :  { %1294 = vrot.lane.b32.xlu0 %v1292_v30, %s2704_s13 }
 0x3fe   :  { %v1269_v56 = vpop.permute.xlu1 %1268 }
 0x3ff   :  { %v1271_v25 = vadd.f32 %v1269_v56, %v3540_v45  ;;  %v1295_v26 = vpop.permute.xlu0 %1294 }
 0x400   :  { %v1297_v20 = vadd.f32 %v1295_v26, %v1150_v46 }
 0x401   :  { %2611 = vtanh.f32 %v1271_v25 }
 0x402   :  { %2613 = vtanh.f32 %v1297_v20 }
 0x40b   :  { %v2612_v63 = vpop.eup %2611 }
 0x40c   :  { %v2614_v2 = vpop.eup %2613  ;;  %1275 = vrot.lane.b32.xlu1 %v2612_v63, %s2700_s3 }
 0x40d   :  { %1301 = vrot.lane.b32.xlu0 %v2614_v2, %s2700_s3 }
 0x47e   :  { %v1276_v38 = vpop.permute.xlu1 %1275 }
 0x47f   :  { %v1278_v27 = vmul.f32 %v1276_v38, %v1273_v5  ;;  %v1302_v59 = vpop.permute.xlu0 %1301 }
 0x480   :  { %v1304_v45 = vmul.f32 %v1302_v59, %v1299_v8 }
 0x481   :  { %v1280_v22 = vadd.f32 %v1279_v62, %v1278_v27 }
 0x482   :  { %v3590_v41 = vadd.f32 %v1305_v57, %v1304_v45 }
 0x483   :  { %1308 = vrot.lane.b32.xlu1 %v1280_v22, %s2700_s3 }
 0x4f5   :  { %v3592_v1 = vpop.permute.xlu1 %1308 }
 0x4f6   :  { %v1311_v37 = vsel %vm981_vm1, %v3592_v1, %v3590_v41 }
 0x4f7   :  { %2336 = vmatmul.mubr.msk.f32.vlgmr.msra.gmra.mrb[18].mxu1 %vm1180_vm3, %v1311_v37 }
 0x4f8   :  { %2479 = vmatpush1.bf16.msra.mxu1 %v3240_v17  ;;  %1513 = vmatprep.mubr.f32.mxu1 %v2702_v40 }
 0x4f9   :  { %2481 = vmatprep.subr.bf16.mxu1 %v3290_v51 }
 0x4fc   :  { %2483 = vmatpush1.bf16.msra.mxu1 %v3303_v10 }
 0x4fd   :  { %2485 = vmatprep.subr.bf16.mxu1 %v3363_v21 }
 0x500   :  { %2487 = vmatpush1.bf16.msra.mxu1 %v3378_v0 }
 0x501   :  { %2489 = vmatprep.subr.bf16.mxu1 %v3405_v28 }
 0x504   :  { %2491 = vmatpush1.bf16.msra.mxu1 %v3410_v35 }
 0x505   :  { %2493 = vmatprep.subr.bf16.mxu1 %v3229_v7 }
 0x5ca   :  { %v1381_v44 = vpop.f32.mrb[18].mxu1 }
 0x5cb   :  { %v1382_v49 = vadd.f32 %v1381_v44, %v3572_v34  ;;  %v1383_v46 = vpop.f32.mrb[19].mxu1 }
 0x5cc   :  { %v1384_v58 = vadd.f32 %v1383_v46, %v3577_v19 }
 0x5cd   :  { %1394 = vrot.lane.b32.xlu0 %v1382_v49, %s2704_s13  ;;  %v1386_v48 = vadd.f32 %v1382_v49, %v3544_v9 }
 0x5ce   :  { %1423 = vrot.lane.b32.xlu1 %v1384_v58, %s2704_s13  ;;  %v1415_v50 = vadd.f32 %v1384_v58, %v3566_v32 }
 0x5cf   :  { %v2337_v14 = vmul.f32 -1.442695, %v1386_v48 }
 0x5d0   :  { %v2338_v18 = vmul.f32 -1.442695, %v1415_v50 }
 0x5d1   :  { %2615 = vpow2.f32 %v2337_v14 }
 0x5d2   :  { %2617 = vpow2.f32 %v2338_v18 }
 0x5db   :  { %v2616_v53 = vpop.eup %2615 }
 0x5dc   :  { %v2618_v55 = vpop.eup %2617  ;;  %v1390_v54 = vadd.f32 1.0, %v2616_v53 }
 0x5dd   :  { %v1419_v6 = vadd.f32 1.0, %v2618_v55 }
 0x5de   :  { %2619 = vrcp.f32 %v1390_v54 }
 0x5df   :  { %2621 = vrcp.f32 %v1419_v6 }
 0x5e8   :  { %v2620_v12 = vpop.eup %2619 }
 0x5e9   :  { %v2622_v43 = vpop.eup %2621  ;;  %v1404_v63 = vsub.f32 1.0, %v2620_v12 }
 0x5ea   :  { %v1433_v27 = vsub.f32 1.0, %v2622_v43  ;;  %v1439_v59 = vmul.f32 %v2622_v43, %v1311_v37 }
 0x63f   :  { %v1395_v3 = vpop.permute.xlu0 %1394 }
 0x640   :  { %v1397_v24 = vmul.f32 %v2620_v12, %v1395_v3  ;;  %v1424_v13 = vpop.permute.xlu1 %1423 }
 0x641   :  { %v1426_v33 = vmul.f32 %v2622_v43, %v1424_v13 }
 0x642   :  { %1399 = vrot.lane.b32.xlu0 %v1397_v24, %s2704_s13 }
 0x643   :  { %1428 = vrot.lane.b32.xlu1 %v1426_v33, %s2704_s13 }
 0x647   :  { %1410 = vrot.lane.b32.xlu1 %v1311_v37, %s2701_s11 }
 0x6b4   :  { %v1400_v47 = vpop.permute.xlu0 %1399 }
 0x6b5   :  { %v1402_v36 = vadd.f32 %v1400_v47, %v3544_v9  ;;  %v1429_v30 = vpop.permute.xlu1 %1428 }
 0x6b6   :  { %v1431_v56 = vadd.f32 %v1429_v30, %v3566_v32 }
 0x6b7   :  { %2623 = vtanh.f32 %v1402_v36 }
 0x6b8   :  { %2625 = vtanh.f32 %v1431_v56 }
 0x6b9   :  { %v1411_v20 = vpop.permute.xlu1 %1410 }
 0x6ba   :  { %v1413_v5 = vmul.f32 %v2620_v12, %v1411_v20 }
 0x6c1   :  { %v2624_v25 = vpop.eup %2623 }
 0x6c2   :  { %1406 = vrot.lane.b32.xlu0 %v2624_v25, %s2700_s3  ;;  %v2626_v26 = vpop.eup %2625 }
 0x6c6   :  { %1435 = vrot.lane.b32.xlu0 %v2626_v26, %s2700_s3 }
 0x734   :  { %v1407_v2 = vpop.permute.xlu0 %1406 }
 0x735   :  { %v1409_v38 = vmul.f32 %v1407_v2, %v1404_v63 }
 0x737   :  { %v1414_v62 = vadd.f32 %v1413_v5, %v1409_v38 }
 0x738   :  { %v1436_v9 = vpop.permute.xlu0 %1435 }
 0x739   :  { %1442 = vrot.lane.b32.xlu1 %v1414_v62, %s2700_s3  ;;  %v1438_v22 = vmul.f32 %v1436_v9, %v1433_v27 }
 0x73b   :  { %v3621_v32 = vadd.f32 %v1439_v59, %v1438_v22 }
 0x7ab   :  { %v3623_v8 = vpop.permute.xlu1 %1442 }
 0x7ac   :  { %v1445_v45 = vsel %vm981_vm1, %v3623_v8, %v3621_v32 }
 0x7ad   :  { %2339 = vmatmul.mubr.msk.f32.vlgmr.msra.gmra.mrb[20].mxu1 %vm1180_vm3, %v1445_v45 }
 0x7ae   :  { %2495 = vmatpush1.bf16.msra.mxu1 %v3240_v17  ;;  %1647 = vmatprep.mubr.f32.mxu1 %v2702_v40 }
 0x7af   :  { %2497 = vmatprep.subr.bf16.mxu1 %v3290_v51 }
 0x7b2   :  { %2499 = vmatpush1.bf16.msra.mxu1 %v3303_v10 }
 0x7b3   :  { %2501 = vmatprep.subr.bf16.mxu1 %v3363_v21 }
 0x7b6   :  { %2503 = vmatpush1.bf16.msra.mxu1 %v3378_v0 }
 0x7b7   :  { %2505 = vmatprep.subr.bf16.mxu1 %v3405_v28 }
 0x7ba   :  { %2507 = vmatpush1.bf16.msra.mxu1 %v3410_v35 }
 0x7bb   :  { %2525 = vmatprep.subr.bf16.mxu1 %v3229_v7 }
 0x880   :  { %v1515_v57 = vpop.f32.mrb[20].mxu1 }
 0x881   :  { %v1516_v37 = vadd.f32 %v1515_v57, %v3572_v34  ;;  %v1517_v44 = vpop.f32.mrb[21].mxu1 }
 0x882   :  { %v1518_v49 = vadd.f32 %v1517_v44, %v3577_v19 }
 0x883   :  { %1528 = vrot.lane.b32.xlu0 %v1516_v37, %s2704_s13  ;;  %v1520_v46 = vadd.f32 %v1516_v37, %v3548_v60 }
 0x884   :  { %1557 = vrot.lane.b32.xlu1 %v1518_v49, %s2704_s13  ;;  %v1549_v58 = vadd.f32 %v1518_v49, %v3562_v23 }
 0x885   :  { %v2340_v48 = vmul.f32 -1.442695, %v1520_v46 }
 0x886   :  { %v2341_v50 = vmul.f32 -1.442695, %v1549_v58 }
 0x887   :  { %2627 = vpow2.f32 %v2340_v48 }
 0x888   :  { %2629 = vpow2.f32 %v2341_v50 }
 0x891   :  { %v2628_v14 = vpop.eup %2627 }
 0x892   :  { %v2630_v18 = vpop.eup %2629  ;;  %v1524_v53 = vadd.f32 1.0, %v2628_v14 }
 0x893   :  { %v1553_v55 = vadd.f32 1.0, %v2630_v18 }
 0x894   :  { %2631 = vrcp.f32 %v1524_v53 }
 0x895   :  { %2633 = vrcp.f32 %v1553_v55 }
 0x89e   :  { %v2632_v54 = vpop.eup %2631 }
 0x89f   :  { %v2634_v12 = vpop.eup %2633  ;;  %v1538_v26 = vsub.f32 1.0, %v2632_v54 }
 0x8a0   :  { %v1567_v38 = vsub.f32 1.0, %v2634_v12  ;;  %v1573_v9 = vmul.f32 %v2634_v12, %v1445_v45 }
 0x8f5   :  { %v1529_v6 = vpop.permute.xlu0 %1528 }
 0x8f6   :  { %v1531_v3 = vmul.f32 %v2632_v54, %v1529_v6  ;;  %v1558_v43 = vpop.permute.xlu1 %1557 }
 0x8f7   :  { %v1560_v24 = vmul.f32 %v2634_v12, %v1558_v43 }
 0x8f8   :  { %1533 = vrot.lane.b32.xlu0 %v1531_v3, %s2704_s13 }
 0x8f9   :  { %1562 = vrot.lane.b32.xlu1 %v1560_v24, %s2704_s13 }
 0x8fd   :  { %1544 = vrot.lane.b32.xlu1 %v1445_v45, %s2701_s11 }
 0x96a   :  { %v1534_v13 = vpop.permute.xlu0 %1533 }
 0x96b   :  { %v1536_v33 = vadd.f32 %v1534_v13, %v3548_v60  ;;  %v1563_v47 = vpop.permute.xlu1 %1562 }
 0x96c   :  { %v1565_v36 = vadd.f32 %v1563_v47, %v3562_v23 }
 0x96d   :  { %2635 = vtanh.f32 %v1536_v33 }
 0x96e   :  { %2637 = vtanh.f32 %v1565_v36 }
 0x96f   :  { %v1545_v25 = vpop.permute.xlu1 %1544 }
 0x970   :  { %v1547_v63 = vmul.f32 %v2632_v54, %v1545_v25 }
 0x977   :  { %v2636_v30 = vpop.eup %2635 }
 0x978   :  { %1540 = vrot.lane.b32.xlu0 %v2636_v30, %s2700_s3  ;;  %v2638_v56 = vpop.eup %2637 }
 0x97c   :  { %1569 = vrot.lane.b32.xlu0 %v2638_v56, %s2700_s3 }
 0x9ea   :  { %v1541_v20 = vpop.permute.xlu0 %1540 }
 0x9eb   :  { %v1543_v2 = vmul.f32 %v1541_v20, %v1538_v26 }
 0x9ed   :  { %v1548_v5 = vadd.f32 %v1547_v63, %v1543_v2 }
 0x9ee   :  { %v1570_v60 = vpop.permute.xlu0 %1569 }
 0x9ef   :  { %1576 = vrot.lane.b32.xlu1 %v1548_v5, %s2700_s3  ;;  %v1572_v62 = vmul.f32 %v1570_v60, %v1567_v38 }
 0x9f1   :  { %v3652_v23 = vadd.f32 %v1573_v9, %v1572_v62 }
 0xa61   :  { %v3654_v27 = vpop.permute.xlu1 %1576 }
 0xa62   :  { %v1579_v22 = vsel %vm981_vm1, %v3654_v27, %v3652_v23 }
 0xa63   :  { %2342 = vmatmul.mubr.msk.f32.vlgmr.msra.gmra.mrb[22].mxu1 %vm1180_vm3, %v1579_v22 }
 0xa64   :  { %2527 = vmatpush1.bf16.msra.mxu1 %v3240_v17  ;;  %1915 = vmatprep.mubr.f32.mxu1 %v2702_v40 }
 0xa65   :  { %2529 = vmatprep.subr.bf16.mxu1 %v3290_v51 }
 0xa68   :  { %2531 = vmatpush1.bf16.msra.mxu1 %v3303_v10 }
 0xa69   :  { %2533 = vmatprep.subr.bf16.mxu1 %v3363_v21 }
 0xa6c   :  { %2535 = vmatpush1.bf16.msra.mxu1 %v3378_v0 }
 0xa6d   :  { %2537 = vmatprep.subr.bf16.mxu1 %v3405_v28 }
 0xa70   :  { %2539 = vmatpush1.bf16.msra.mxu1 %v3410_v35 }
 0xa71   :  { %2557 = vmatprep.subr.bf16.mxu1 %v3229_v7 }
 0xb36   :  { %v1649_v59 = vpop.f32.mrb[22].mxu1 }
 0xb37   :  { %v1650_v45 = vadd.f32 %v1649_v59, %v3572_v34  ;;  %v1651_v57 = vpop.f32.mrb[23].mxu1 }
 0xb38   :  { %v1652_v37 = vadd.f32 %v1651_v57, %v3577_v19 }
 0xb39   :  { %1662 = vrot.lane.b32.xlu0 %v1650_v45, %s2704_s13  ;;  %v1654_v44 = vadd.f32 %v1650_v45, %v3552_v42 }
 0xb3a   :  { %1691 = vrot.lane.b32.xlu1 %v1652_v37, %s2704_s13  ;;  %v1683_v49 = vadd.f32 %v1652_v37, %v3558_v11 }
 0xb3b   :  { %v2343_v46 = vmul.f32 -1.442695, %v1654_v44 }
 0xb3c   :  { %v2344_v58 = vmul.f32 -1.442695, %v1683_v49 }
 0xb3d   :  { %2639 = vpow2.f32 %v2343_v46 }
 0xb3e   :  { %2641 = vpow2.f32 %v2344_v58 }
 0xb47   :  { %v2640_v48 = vpop.eup %2639 }
 0xb48   :  { %v2642_v7 = vpop.eup %2641  ;;  %v1658_v50 = vadd.f32 1.0, %v2640_v48 }
 0xb49   :  { %v1687_v14 = vadd.f32 1.0, %v2642_v7 }
 0xb4a   :  { %2643 = vrcp.f32 %v1658_v50 }
 0xb4b   :  { %2645 = vrcp.f32 %v1687_v14 }
 0xb54   :  { %v2644_v18 = vpop.eup %2643 }
 0xb55   :  { %v2646_v55 = vpop.eup %2645  ;;  %v1672_v30 = vsub.f32 1.0, %v2644_v18 }
 0xb56   :  { %v1701_v63 = vsub.f32 1.0, %v2646_v55  ;;  %v1707_v5 = vmul.f32 %v2646_v55, %v1579_v22 }
 0xbab   :  { %v1663_v53 = vpop.permute.xlu0 %1662 }
 0xbac   :  { %v1665_v54 = vmul.f32 %v2644_v18, %v1663_v53  ;;  %v1692_v6 = vpop.permute.xlu1 %1691 }
 0xbad   :  { %v1694_v12 = vmul.f32 %v2646_v55, %v1692_v6 }
 0xbae   :  { %1667 = vrot.lane.b32.xlu0 %v1665_v54, %s2704_s13 }
 0xbaf   :  { %1696 = vrot.lane.b32.xlu1 %v1694_v12, %s2704_s13 }
 0xbb3   :  { %1678 = vrot.lane.b32.xlu1 %v1579_v22, %s2701_s11 }
 0xc20   :  { %v1668_v3 = vpop.permute.xlu0 %1667 }
 0xc21   :  { %v1670_v43 = vadd.f32 %v1668_v3, %v3552_v42  ;;  %v1697_v24 = vpop.permute.xlu1 %1696 }
 0xc22   :  { %v1699_v13 = vadd.f32 %v1697_v24, %v3558_v11 }
 0xc23   :  { %2647 = vtanh.f32 %v1670_v43 }
 0xc24   :  { %2649 = vtanh.f32 %v1699_v13 }
 0xc25   :  { %v1679_v36 = vpop.permute.xlu1 %1678 }
 0xc26   :  { %v1681_v25 = vmul.f32 %v2644_v18, %v1679_v36 }
 0xc2d   :  { %v2648_v33 = vpop.eup %2647 }
 0xc2e   :  { %1674 = vrot.lane.b32.xlu0 %v2648_v33, %s2700_s3  ;;  %v2650_v47 = vpop.eup %2649 }
 0xc32   :  { %1703 = vrot.lane.b32.xlu0 %v2650_v47, %s2700_s3 }
 0xca0   :  { %v1675_v56 = vpop.permute.xlu0 %1674 }
 0xca1   :  { %v1677_v26 = vmul.f32 %v1675_v56, %v1672_v30 }
 0xca3   :  { %v1682_v20 = vadd.f32 %v1681_v25, %v1677_v26 }
 0xca4   :  { %v1704_v42 = vpop.permute.xlu0 %1703 }
 0xca5   :  { %1710 = vrot.lane.b32.xlu1 %v1682_v20, %s2700_s3  ;;  %v1706_v2 = vmul.f32 %v1704_v42, %v1701_v63 }
 0xca7   :  { %v3683_v11 = vadd.f32 %v1707_v5, %v1706_v2 }
 0xd17   :  { %v1711_v60 = vpop.permute.xlu1 %1710 }
 0xd18   :  { %v1713_v38 = vsel %vm981_vm1, %v1711_v60, %v3683_v11 }
 0xd19   :  { %2345 = vmatmul.mubr.msk.f32.vlgmr.msra.gmra.mrb[48].mxu0 %vm1180_vm3, %v1713_v38 }
 0xd1a   :  { %2543 = vmatpush1.bf16.msra.mxu0 %v3240_v17  ;;  %2049 = vmatprep.mubr.f32.mxu0 %v2702_v40 }
 0xd1b   :  { %2545 = vmatprep.subr.bf16.mxu0 %v3290_v51 }
 0xd1e   :  { %2547 = vmatpush1.bf16.msra.mxu0 %v3303_v10 }
 0xd1f   :  { %2549 = vmatprep.subr.bf16.mxu0 %v3363_v21 }
 0xd22   :  { %2551 = vmatpush1.bf16.msra.mxu0 %v3378_v0 }
 0xd23   :  { %2553 = vmatprep.subr.bf16.mxu0 %v3405_v28 }
 0xd26   :  { %2555 = vmatpush1.bf16.msra.mxu0 %v3410_v35 }
 0xdec   :  { %v1783_v62 = vpop.f32.mrb[48].mxu0 }
 0xded   :  { %v1784_v9 = vadd.f32 %v1783_v62, %v3572_v34  ;;  %v1785_v22 = vpop.f32.mrb[49].mxu0 }
 0xdee   :  { %v1786_v59 = vadd.f32 %v1785_v22, %v3577_v19 }
 0xdef   :  { %1796 = vrot.lane.b32.xlu0 %v1784_v9, %s2704_s13  ;;  %v1788_v45 = vadd.f32 %v1784_v9, %v3556_v29 }
 0xdf0   :  { %1825 = vrot.lane.b32.xlu1 %v1786_v59, %s2704_s13  ;;  %v1817_v57 = vadd.f32 %v1786_v59, %v3554_v39 }
 0xdf1   :  { %v2346_v37 = vmul.f32 -1.442695, %v1788_v45 }
 0xdf2   :  { %v2347_v44 = vmul.f32 -1.442695, %v1817_v57 }
 0xdf3   :  { %2651 = vpow2.f32 %v2346_v37 }
 0xdf4   :  { %2653 = vpow2.f32 %v2347_v44 }
 0xdfd   :  { %v2652_v49 = vpop.eup %2651 }
 0xdfe   :  { %v2654_v46 = vpop.eup %2653  ;;  %v1792_v58 = vadd.f32 1.0, %v2652_v49 }
 0xdff   :  { %v1821_v48 = vadd.f32 1.0, %v2654_v46 }
 0xe00   :  { %2655 = vrcp.f32 %v1792_v58 }
 0xe01   :  { %2657 = vrcp.f32 %v1821_v48 }
 0xe0a   :  { %v2656_v7 = vpop.eup %2655 }
 0xe0b   :  { %v2658_v14 = vpop.eup %2657  ;;  %v1806_v33 = vsub.f32 1.0, %v2656_v7 }
 0xe0c   :  { %v1835_v25 = vsub.f32 1.0, %v2658_v14 }
 0xe61   :  { %v1797_v50 = vpop.permute.xlu0 %1796 }
 0xe62   :  { %v1799_v18 = vmul.f32 %v2656_v7, %v1797_v50  ;;  %v1826_v53 = vpop.permute.xlu1 %1825 }
 0xe63   :  { %v1828_v55 = vmul.f32 %v2658_v14, %v1826_v53 }
 0xe64   :  { %1801 = vrot.lane.b32.xlu0 %v1799_v18, %s2704_s13 }
 0xe65   :  { %1830 = vrot.lane.b32.xlu1 %v1828_v55, %s2704_s13 }
 0xe69   :  { %1812 = vrot.lane.b32.xlu1 %v1713_v38, %s2701_s11 }
 0xed6   :  { %v1802_v54 = vpop.permute.xlu0 %1801 }
 0xed7   :  { %v1804_v6 = vadd.f32 %v1802_v54, %v3556_v29  ;;  %v1831_v12 = vpop.permute.xlu1 %1830  ;;  %v1841_v29 = vmul.f32 %v2658_v14, %v1713_v38 }
 0xed8   :  { %v1833_v3 = vadd.f32 %v1831_v12, %v3554_v39 }
 0xed9   :  { %2659 = vtanh.f32 %v1804_v6 }
 0xeda   :  { %2661 = vtanh.f32 %v1833_v3 }
 0xedb   :  { %v1813_v13 = vpop.permute.xlu1 %1812 }
 0xedc   :  { %v1815_v36 = vmul.f32 %v2656_v7, %v1813_v13 }
 0xee3   :  { %v2660_v43 = vpop.eup %2659 }
 0xee4   :  { %1808 = vrot.lane.b32.xlu0 %v2660_v43, %s2700_s3  ;;  %v2662_v24 = vpop.eup %2661 }
 0xee8   :  { %1837 = vrot.lane.b32.xlu0 %v2662_v24, %s2700_s3 }
 0xf56   :  { %v1809_v47 = vpop.permute.xlu0 %1808 }
 0xf57   :  { %v1811_v30 = vmul.f32 %v1809_v47, %v1806_v33 }
 0xf59   :  { %v1816_v56 = vadd.f32 %v1815_v36, %v1811_v30 }
 0xf5a   :  { %v1838_v26 = vpop.permute.xlu0 %1837 }
 0xf5b   :  { %v1840_v20 = vmul.f32 %v1838_v26, %v1835_v25  ;;  %1844 = vrot.lane.b32.xlu1 %v1816_v56, %s2700_s3 }
 0xf5d   :  { %v1842_v39 = vadd.f32 %v1841_v29, %v1840_v20 }
 0xf5f   :  { %v2248_v42 = vsel %vm981_vm1, %v1711_v60, %v1842_v39 }
 0xf60   :  { %v2260_v63 = vsel %vm1180_vm3, %v2248_v42, 0.0 }
 0xf61   :  { %2268 = vst [vmem:[%s3821_s8 + $0x18] sm:$0xff] %v2260_v63 }
 0xfcd   :  { %v1845_v2 = vpop.permute.xlu1 %1844 }
 0xfce   :  { %v1847_v5 = vsel %vm981_vm1, %v1845_v2, %v1842_v39  ;;  %v2249_v62 = vsel %vm981_vm1, %v1845_v2, %v3683_v11 }
 0xfcf   :  { %v2261_v38 = vsel %vm1180_vm3, %v2249_v62, 0.0  ;;  %2348 = vmatmul.mubr.msk.f32.vlgmr.msra.gmra.mrb[24].mxu1 %vm1180_vm3, %v1847_v5 }
 0xfd0   :  { %2269 = vst [vmem:[%s3821_s8 + $0x20] sm:$0xff] %v2261_v38  ;;  %2559 = vmatpush1.bf16.msra.mxu1 %v3240_v17  ;;  %2183 = vmatprep.mubr.f32.mxu1 %v2702_v40 }
 0xfd1   :  { %2561 = vmatprep.subr.bf16.mxu1 %v3290_v51 }
 0xfd4   :  { %2563 = vmatpush1.bf16.msra.mxu1 %v3303_v10 }
 0xfd5   :  { %2565 = vmatprep.subr.bf16.mxu1 %v3363_v21 }
 0xfd8   :  { %2567 = vmatpush1.bf16.msra.mxu1 %v3378_v0 }
 0xfd9   :  { %2569 = vmatprep.subr.bf16.mxu1 %v3405_v28 }
 0xfdc   :  { %2571 = vmatpush1.bf16.msra.mxu1 %v3410_v35 }
0x10a2   :  { %v1917_v11 = vpop.f32.mrb[24].mxu1 }
0x10a3   :  { %v1918_v60 = vadd.f32 %v1917_v11, %v3572_v34  ;;  %v1919_v9 = vpop.f32.mrb[25].mxu1 }
0x10a4   :  { %v1920_v17 = vadd.f32 %v1919_v9, %v3577_v19 }
0x10a5   :  { %1930 = vrot.lane.b32.xlu0 %v1918_v60, %s2704_s13  ;;  %v1922_v40 = vadd.f32 %v1918_v60, %v3560_v61 }
0x10a6   :  { %1959 = vrot.lane.b32.xlu1 %v1920_v17, %s2704_s13  ;;  %v1951_v51 = vadd.f32 %v1920_v17, %v3550_v52 }
0x10a7   :  { %v2349_v10 = vmul.f32 -1.442695, %v1922_v40 }
0x10a8   :  { %v2350_v21 = vmul.f32 -1.442695, %v1951_v51 }
0x10a9   :  { %2663 = vpow2.f32 %v2349_v10 }
0x10aa   :  { %2665 = vpow2.f32 %v2350_v21 }
0x10b3   :  { %v2664_v0 = vpop.eup %2663 }
0x10b4   :  { %v2666_v28 = vpop.eup %2665  ;;  %v1926_v35 = vadd.f32 1.0, %v2664_v0 }
0x10b5   :  { %v1955_v22 = vadd.f32 1.0, %v2666_v28 }
0x10b6   :  { %2667 = vrcp.f32 %v1926_v35 }
0x10b7   :  { %2669 = vrcp.f32 %v1955_v22 }
0x10c0   :  { %v2668_v59 = vpop.eup %2667 }
0x10c1   :  { %v2670_v57 = vpop.eup %2669  ;;  %v1940_v53 = vsub.f32 1.0, %v2668_v59 }
0x10c2   :  { %v1969_v3 = vsub.f32 1.0, %v2670_v57 }
0x1117   :  { %v1931_v45 = vpop.permute.xlu0 %1930 }
0x1118   :  { %v1933_v37 = vmul.f32 %v2668_v59, %v1931_v45  ;;  %v1960_v44 = vpop.permute.xlu1 %1959 }
0x1119   :  { %v1962_v49 = vmul.f32 %v2670_v57, %v1960_v44 }
0x111a   :  { %1935 = vrot.lane.b32.xlu0 %v1933_v37, %s2704_s13 }
0x111b   :  { %1964 = vrot.lane.b32.xlu1 %v1962_v49, %s2704_s13 }
0x111f   :  { %1946 = vrot.lane.b32.xlu1 %v1847_v5, %s2701_s11 }
0x118c   :  { %v1936_v46 = vpop.permute.xlu0 %1935 }
0x118d   :  { %v1938_v58 = vadd.f32 %v1936_v46, %v3560_v61  ;;  %v1965_v48 = vpop.permute.xlu1 %1964  ;;  %v1975_v61 = vmul.f32 %v2670_v57, %v1847_v5 }
0x118e   :  { %v1967_v7 = vadd.f32 %v1965_v48, %v3550_v52 }
0x118f   :  { %2671 = vtanh.f32 %v1938_v58 }
0x1190   :  { %2673 = vtanh.f32 %v1967_v7 }
0x1191   :  { %v1947_v18 = vpop.permute.xlu1 %1946 }
0x1192   :  { %v1949_v54 = vmul.f32 %v2668_v59, %v1947_v18 }
0x1199   :  { %v2672_v50 = vpop.eup %2671 }
0x119a   :  { %1942 = vrot.lane.b32.xlu0 %v2672_v50, %s2700_s3  ;;  %v2674_v14 = vpop.eup %2673 }
0x119e   :  { %1971 = vrot.lane.b32.xlu0 %v2674_v14, %s2700_s3 }
0x120c   :  { %v1943_v55 = vpop.permute.xlu0 %1942 }
0x120d   :  { %v1945_v6 = vmul.f32 %v1943_v55, %v1940_v53 }
0x120f   :  { %v1950_v12 = vadd.f32 %v1949_v54, %v1945_v6 }
0x1210   :  { %v1972_v43 = vpop.permute.xlu0 %1971 }
0x1211   :  { %v1974_v24 = vmul.f32 %v1972_v43, %v1969_v3  ;;  %1978 = vrot.lane.b32.xlu1 %v1950_v12, %s2700_s3 }
0x1213   :  { %v1976_v52 = vadd.f32 %v1975_v61, %v1974_v24 }
0x1215   :  { %v2247_v13 = vsel %vm981_vm1, %v3654_v27, %v1976_v52 }
0x1216   :  { %v2259_v33 = vsel %vm1180_vm3, %v2247_v13, 0.0 }
0x1217   :  { %2267 = vst [vmem:[%s3821_s8 + $0x10] sm:$0xff] %v2259_v33 }
0x1283   :  { %v1979_v47 = vpop.permute.xlu1 %1978 }
0x1284   :  { %v1981_v36 = vsel %vm981_vm1, %v1979_v47, %v1976_v52  ;;  %v2250_v30 = vsel %vm981_vm1, %v1979_v47, %v3652_v23 }
0x1285   :  { %v2262_v56 = vsel %vm1180_vm3, %v2250_v30, 0.0  ;;  %2351 = vmatmul.mubr.msk.f32.vlgmr.msra.gmra.mrb[50].mxu0 %vm1180_vm3, %v1981_v36 }
0x1286   :  { %2270 = vst [vmem:[%s3821_s8 + $0x28] sm:$0xff] %v2262_v56 }
0x1358   :  { %v2051_v27 = vpop.f32.mrb[50].mxu0 }
0x1359   :  { %v2052_v25 = vadd.f32 %v2051_v27, %v3572_v34  ;;  %v2053_v26 = vpop.f32.mrb[51].mxu0 }
0x135a   :  { %v2054_v29 = vadd.f32 %v2053_v26, %v3577_v19 }
0x135b   :  { %2064 = vrot.lane.b32.xlu0 %v2052_v25, %s2704_s13  ;;  %v2056_v23 = vadd.f32 %v2052_v25, %v3564_v4 }
0x135c   :  { %2093 = vrot.lane.b32.xlu1 %v2054_v29, %s2704_s13  ;;  %v2085_v20 = vadd.f32 %v2054_v29, %v3546_v15 }
0x135d   :  { %v2352_v39 = vmul.f32 -1.442695, %v2056_v23 }
0x135e   :  { %v2353_v42 = vmul.f32 -1.442695, %v2085_v20 }
0x135f   :  { %2675 = vpow2.f32 %v2352_v39 }
0x1360   :  { %2677 = vpow2.f32 %v2353_v42 }
0x1369   :  { %v2676_v63 = vpop.eup %2675 }
0x136a   :  { %v2678_v2 = vpop.eup %2677  ;;  %v2060_v5 = vadd.f32 1.0, %v2676_v63 }
0x136b   :  { %v2089_v62 = vadd.f32 1.0, %v2678_v2 }
0x136c   :  { %2679 = vrcp.f32 %v2060_v5 }
0x136d   :  { %2681 = vrcp.f32 %v2089_v62 }
0x1376   :  { %v2680_v38 = vpop.eup %2679 }
0x1377   :  { %v2682_v60 = vpop.eup %2681  ;;  %v2074_v59 = vsub.f32 1.0, %v2680_v38 }
0x1378   :  { %v2103_v49 = vsub.f32 1.0, %v2682_v60 }
0x13cd   :  { %v2065_v11 = vpop.permute.xlu0 %2064 }
0x13ce   :  { %v2067_v9 = vmul.f32 %v2680_v38, %v2065_v11  ;;  %v2094_v17 = vpop.permute.xlu1 %2093 }
0x13cf   :  { %v2096_v40 = vmul.f32 %v2682_v60, %v2094_v17 }
0x13d0   :  { %2069 = vrot.lane.b32.xlu0 %v2067_v9, %s2704_s13 }
0x13d1   :  { %2098 = vrot.lane.b32.xlu1 %v2096_v40, %s2704_s13 }
0x13d5   :  { %2080 = vrot.lane.b32.xlu1 %v1981_v36, %s2701_s11 }
0x1442   :  { %v2070_v51 = vpop.permute.xlu0 %2069 }
0x1443   :  { %v2072_v10 = vadd.f32 %v2070_v51, %v3564_v4  ;;  %v2099_v21 = vpop.permute.xlu1 %2098  ;;  %v2109_v4 = vmul.f32 %v2682_v60, %v1981_v36 }
0x1444   :  { %v2101_v0 = vadd.f32 %v2099_v21, %v3546_v15 }
0x1445   :  { %2683 = vtanh.f32 %v2072_v10 }
0x1446   :  { %2685 = vtanh.f32 %v2101_v0 }
0x1447   :  { %v2081_v22 = vpop.permute.xlu1 %2080 }
0x1448   :  { %v2083_v57 = vmul.f32 %v2680_v38, %v2081_v22 }
0x144f   :  { %v2684_v28 = vpop.eup %2683 }
0x1450   :  { %2076 = vrot.lane.b32.xlu0 %v2684_v28, %s2700_s3  ;;  %v2686_v35 = vpop.eup %2685 }
0x1454   :  { %2105 = vrot.lane.b32.xlu0 %v2686_v35, %s2700_s3 }
0x14c2   :  { %v2077_v45 = vpop.permute.xlu0 %2076 }
0x14c3   :  { %v2079_v37 = vmul.f32 %v2077_v45, %v2074_v59 }
0x14c5   :  { %v2084_v44 = vadd.f32 %v2083_v57, %v2079_v37 }
0x14c6   :  { %v2106_v46 = vpop.permute.xlu0 %2105 }
0x14c7   :  { %v2108_v58 = vmul.f32 %v2106_v46, %v2103_v49  ;;  %2112 = vrot.lane.b32.xlu1 %v2084_v44, %s2700_s3 }
0x14c9   :  { %v2110_v15 = vadd.f32 %v2109_v4, %v2108_v58 }
0x14cb   :  { %v2246_v48 = vsel %vm981_vm1, %v3623_v8, %v2110_v15 }
0x14cc   :  { %v2258_v7 = vsel %vm1180_vm3, %v2246_v48, 0.0 }
0x14cd   :  { %2266 = vst [vmem:[%s3821_s8 + $0x8] sm:$0xff] %v2258_v7 }
0x1539   :  { %v2113_v50 = vpop.permute.xlu1 %2112 }
0x153a   :  { %v2115_v14 = vsel %vm981_vm1, %v2113_v50, %v2110_v15  ;;  %v2251_v18 = vsel %vm981_vm1, %v2113_v50, %v3621_v32 }
0x153b   :  { %v2263_v53 = vsel %vm1180_vm3, %v2251_v18, 0.0  ;;  %2354 = vmatmul.mubr.msk.f32.vlgmr.msra.gmra.mrb[26].mxu1 %vm1180_vm3, %v2115_v14 }
0x153c   :  { %2271 = vst [vmem:[%s3821_s8 + $0x30] sm:$0xff] %v2263_v53 }
0x160e   :  { %v2185_v8 = vpop.f32.mrb[26].mxu1 }
0x160f   :  { %v2186_v55 = vadd.f32 %v2185_v8, %v3572_v34  ;;  %v2187_v54 = vpop.f32.mrb[27].mxu1 }
0x1610   :  { %v2188_v6 = vadd.f32 %v2187_v54, %v3577_v19 }
0x1611   :  { %2198 = vrot.lane.b32.xlu0 %v2186_v55, %s2704_s13  ;;  %v2190_v32 = vadd.f32 %v2186_v55, %v3574_v31 }
0x1612   :  { %2227 = vrot.lane.b32.xlu1 %v2188_v6, %s2704_s13  ;;  %v2219_v12 = vadd.f32 %v2188_v6, %v3542_v16 }
0x1613   :  { %v2355_v3 = vmul.f32 -1.442695, %v2190_v32 }
0x1614   :  { %v2356_v43 = vmul.f32 -1.442695, %v2219_v12 }
0x1615   :  { %2687 = vpow2.f32 %v2355_v3 }
0x1616   :  { %2689 = vpow2.f32 %v2356_v43 }
0x161f   :  { %v2688_v61 = vpop.eup %2687 }
0x1620   :  { %v2690_v24 = vpop.eup %2689  ;;  %v2194_v52 = vadd.f32 1.0, %v2688_v61 }
0x1621   :  { %v2223_v13 = vadd.f32 1.0, %v2690_v24 }
0x1622   :  { %2691 = vrcp.f32 %v2194_v52 }
0x1623   :  { %2693 = vrcp.f32 %v2223_v13 }
0x162c   :  { %v2692_v34 = vpop.eup %2691 }
0x162d   :  { %v2694_v33 = vpop.eup %2693  ;;  %v2208_v39 = vsub.f32 1.0, %v2692_v34 }
0x162e   :  { %v2237_v62 = vsub.f32 1.0, %v2694_v33 }
0x1683   :  { %v2199_v19 = vpop.permute.xlu0 %2198 }
0x1684   :  { %v2201_v47 = vmul.f32 %v2692_v34, %v2199_v19  ;;  %v2228_v36 = vpop.permute.xlu1 %2227 }
0x1685   :  { %v2230_v30 = vmul.f32 %v2694_v33, %v2228_v36 }
0x1686   :  { %2203 = vrot.lane.b32.xlu0 %v2201_v47, %s2704_s13 }
0x1687   :  { %2232 = vrot.lane.b32.xlu1 %v2230_v30, %s2704_s13 }
0x168b   :  { %2214 = vrot.lane.b32.xlu1 %v2115_v14, %s2701_s11 }
0x16f8   :  { %v2204_v56 = vpop.permute.xlu0 %2203 }
0x16f9   :  { %v2206_v27 = vadd.f32 %v2204_v56, %v3574_v31  ;;  %v2233_v25 = vpop.permute.xlu1 %2232  ;;  %v2243_v31 = vmul.f32 %v2694_v33, %v2115_v14 }
0x16fa   :  { %v2235_v26 = vadd.f32 %v2233_v25, %v3542_v16 }
0x16fb   :  { %2695 = vtanh.f32 %v2206_v27 }
0x16fc   :  { %2697 = vtanh.f32 %v2235_v26 }
0x16fd   :  { %v2215_v20 = vpop.permute.xlu1 %2214 }
0x16fe   :  { %v2217_v63 = vmul.f32 %v2692_v34, %v2215_v20 }
0x1705   :  { %v2696_v29 = vpop.eup %2695 }
0x1706   :  { %2210 = vrot.lane.b32.xlu0 %v2696_v29, %s2700_s3  ;;  %v2698_v23 = vpop.eup %2697 }
0x170a   :  { %2239 = vrot.lane.b32.xlu0 %v2698_v23, %s2700_s3 }
0x1778   :  { %v2211_v42 = vpop.permute.xlu0 %2210 }
0x1779   :  { %v2213_v2 = vmul.f32 %v2211_v42, %v2208_v39 }
0x177b   :  { %v2218_v5 = vadd.f32 %v2217_v63, %v2213_v2 }
0x177c   :  { %v2240_v38 = vpop.permute.xlu0 %2239 }
0x177d   :  { %v2242_v11 = vmul.f32 %v2240_v38, %v2237_v62  ;;  %2253 = vrot.lane.b32.xlu1 %v2218_v5, %s2700_s3 }
0x177f   :  { %v2244_v16 = vadd.f32 %v2243_v31, %v2242_v11 }
0x1781   :  { %v2245_v60 = vsel %vm981_vm1, %v3592_v1, %v2244_v16 }
0x1782   :  { %v2257_v9 = vsel %vm1180_vm3, %v2245_v60, 0.0 }
0x1783   :  { %2265 = vst [vmem:[%s3821_s8] sm:$0xff] %v2257_v9 }
0x17ef   :  { %v2254_v17 = vpop.permute.xlu1 %2253 }
0x17f0   :  { %v2256_v40 = vsel %vm981_vm1, %v2254_v17, %v3590_v41 }
0x17f1   :  { %v2264_v51 = vsel %vm1180_vm3, %v2256_v40, 0.0 }
0x17f2   :  { %2272 = vst [vmem:[%s3821_s8 + $0x38] sm:$0xff] %v2264_v51 }

</bundles_post_ra>
